<compile_context>
chip_gen: v5e
topology: v5e:2x2
jax: 0.10.0
libtpu: 0.0.40
codegen_flags: <defaults>
</compile_context>

<pallas_src>
import functools

import jax
import jax.numpy as jnp
from jax.experimental import pallas as pl
from jax.experimental.pallas import tpu as pltpu


# ------------------------------- shared math -------------------------------- #

def _layernorm(x, gamma, beta, eps=1e-5):
    mu = jnp.mean(x, axis=-1, keepdims=True)
    var = jnp.mean((x - mu) ** 2, axis=-1, keepdims=True)
    return (x - mu) * jax.lax.rsqrt(var + eps) * gamma + beta


# ------------------------------ Pallas kernel -------------------------------- #

def _decoder_kernel(hin_ref, wqkv_ref, wo_ref, w1_ref, w2_ref, vec_ref,
                    o_ref, h_ref, *, n_heads):
    layer = pl.program_id(1)
    n_layers = pl.num_programs(1)

    Bt, N, F = h_ref.shape
    H = n_heads
    dh = F // H
    M = Bt * N
    Hm = w1_ref.shape[-1]
    f32 = jnp.float32
    bf16 = jnp.bfloat16

    # Initialize the residual-stream carry once per batch tile.
    @pl.when(layer == 0)
    def _init():
        h_ref[...] = hin_ref[...].astype(f32)

    h = h_ref[...]                                    # (Bt, N, F) f32

    # Packed per-layer vector slab: LN params + biases, one row each.
    vec = vec_ref[0]                                  # (8, W) f32
    ln1g = vec[0:1, :F]
    ln1b = vec[1:2, :F]
    ln2g = vec[2:3, :F]
    ln2b = vec[3:4, :F]
    bqkv = vec[4:5, :3 * F]
    bo = vec[5:6, :F]
    b1 = vec[6:7, :Hm]
    b2 = vec[7:8, :F]

    # ----------------- pre-norm multi-head self-attention ------------------ #
    y2 = _layernorm(h, ln1g, ln1b).reshape(M, F).astype(bf16)
    # Single fused QKV MXU push (scale already folded into the Q block).
    qkv = (jnp.dot(y2, wqkv_ref[0], preferred_element_type=f32) + bqkv)
    qkv = qkv.astype(bf16)                            # (M, 3F)

    def to_heads(base):
        # Static lane slices -> head-batched (H*Bt, N, dh) layout.
        cols = [qkv[:, base + hh * dh: base + (hh + 1) * dh].reshape(Bt, N, dh)
                for hh in range(H)]
        return jnp.stack(cols, axis=0).reshape(H * Bt, N, dh)

    qh = to_heads(0)
    kh = to_heads(F)
    vh = to_heads(2 * F)

    s = jnp.einsum("gnd,gmd->gnm", qh, kh,
                   preferred_element_type=f32)        # (H*Bt, N, N)
    s = s - jnp.max(s, axis=-1, keepdims=True)
    p = jnp.exp(s)
    p = p * pl.reciprocal(jnp.sum(p, axis=-1, keepdims=True), approx=True)
    ctx = jnp.einsum("gnm,gmd->gnd", p.astype(bf16), vh,
                     preferred_element_type=f32)      # (H*Bt, N, dh)

    # Reassemble full-width context and do ONE (F, F) output projection.
    ctx = ctx.reshape(H, Bt, N, dh)
    ctx = jnp.concatenate([ctx[hh] for hh in range(H)], axis=-1)   # (Bt, N, F)
    ctx2 = ctx.reshape(M, F).astype(bf16)
    attn = jnp.dot(ctx2, wo_ref[0], preferred_element_type=f32) + bo
    h = h + attn.reshape(Bt, N, F)

    # --------------------------------- MLP ---------------------------------- #
    y2 = _layernorm(h, ln2g, ln2b).reshape(M, F).astype(bf16)
    z = jnp.dot(y2, w1_ref[0], preferred_element_type=f32) + b1
    # tanh GELU -> EUP slot (see TODO at top re: torch exact-erf default).
    z = jax.nn.gelu(z, approximate=True)
    z = jnp.dot(z.astype(bf16), w2_ref[0], preferred_element_type=f32) + b2
    h = h + z.reshape(Bt, N, F)

    h_ref[...] = h

    @pl.when(layer == n_layers - 1)
    def _store():
        o_ref[...] = h.astype(o_ref.dtype)


# --------------------------- pallas_call wrapper ----------------------------- #

def _pick_vmem_limit(est_bytes):
    phys = 128 * 1024 * 1024
    try:
        info = pltpu.get_tpu_info()
        phys = int(getattr(info, "vmem_capacity_bytes", phys)) or phys
    except Exception:
        pass
    # Leave ~20% headroom for compiler scratch / buffer rounding (critical on
    # v7x where physical VMEM is 64 MiB per TensorCore).
    cap = int(phys * 0.8)
    want = max(32 * 1024 * 1024, 2 * int(est_bytes))
    return max(min(want, cap), 16 * 1024 * 1024)


def run_decoder_transformer(h_init, params, *, n_heads, batch_tile):
    """h_init: (B, N, F) f32 = tokens (full-dataset order) + positional embed."""
    B, N, F = h_init.shape
    L = params["w_q"].shape[0]
    Hm = params["w1"].shape[-1]
    H = n_heads
    dh = F // H
    Bt = batch_tile
    assert F % H == 0 and B % Bt == 0

    bf16, f32 = jnp.bfloat16, jnp.float32
    scale = 1.0 / float(dh) ** 0.5

    # ---- host-side weight packing (bf16 matrices, scale folded into Q) ----
    wqkv = jnp.concatenate(
        [params["w_q"] * scale, params["w_k"], params["w_v"]], axis=-1
    ).astype(bf16)                                                  # (L, F, 3F)
    bqkv = jnp.concatenate(
        [params["b_q"] * scale, params["b_k"], params["b_v"]], axis=-1
    ).astype(f32)                                                   # (L, 1, 3F)
    wo = params["w_o"].astype(bf16)                                 # (L, F, F)
    w1 = params["w1"].astype(bf16)                                  # (L, F, Hm)
    w2 = params["w2"].astype(bf16)                                  # (L, Hm, F)

    W = max(3 * F, Hm)

    def row(v):
        v = v.astype(f32)
        return jnp.pad(v, ((0, 0), (0, 0), (0, W - v.shape[-1])))

    vec = jnp.concatenate(
        [row(params["ln1_g"]), row(params["ln1_b"]),
         row(params["ln2_g"]), row(params["ln2_b"]),
         row(bqkv), row(params["b_o"]), row(params["b1"]), row(params["b2"])],
        axis=1)                                                     # (L, 8, W)

    in_specs = [
        pl.BlockSpec((Bt, N, F), lambda b, l: (b, 0, 0)),      # h_init
        pl.BlockSpec((1, F, 3 * F), lambda b, l: (l, 0, 0)),   # fused QKV
        pl.BlockSpec((1, F, F), lambda b, l: (l, 0, 0)),       # Wo
        pl.BlockSpec((1, F, Hm), lambda b, l: (l, 0, 0)),      # W1
        pl.BlockSpec((1, Hm, F), lambda b, l: (l, 0, 0)),      # W2
        pl.BlockSpec((1, 8, W), lambda b, l: (l, 0, 0)),       # LN params + biases
    ]
    out_specs = pl.BlockSpec((Bt, N, F), lambda b, l: (b, 0, 0))

    # Advisory cost estimate (whole call).
    flops = int(B * N * L * (8 * F * F + 4 * F * Hm + 4 * N * F))
    transc = int(B * L * N * (H * N + Hm))
    per_layer_w = (4 * F * F + 2 * F * Hm) * 2 + 8 * W * 4
    bytes_acc = int((B // Bt) * L * per_layer_w + B * N * F * 4 + B * N * F * 2)

    # VMEM working-set estimate (double-buffered slabs + activations).
    act = Bt * N * (3 * F * 8 + 12 * F * 4 + 3 * Hm * 4) + Bt * H * N * N * 8
    est = 2 * per_layer_w + 3 * Bt * N * F * 4 + 2 * Bt * N * F * 2 + act
    vmem_limit = _pick_vmem_limit(est)

    kernel = functools.partial(_decoder_kernel, n_heads=H)

    return pl.pallas_call(
        kernel,
        out_shape=jax.ShapeDtypeStruct((B, N, F), jnp.bfloat16),
        grid=(B // Bt, L),
        in_specs=in_specs,
        out_specs=out_specs,
        scratch_shapes=[pltpu.VMEM((Bt, N, F), jnp.float32)],   # activation carry
        compiler_params=pltpu.CompilerParams(
            dimension_semantics=("parallel", "arbitrary"),
            vmem_limit_bytes=vmem_limit),
        cost_estimate=pl.CostEstimate(
            flops=flops, transcendentals=transc, bytes_accessed=bytes_acc),
    )(h_init, wqkv, wo, w1, w2, vec)


# ------------------------------ module wrapper ------------------------------- #

def init_params(key, pos_input_dim, n_layers, n_features, dtype=jnp.float32):
    F, C, L, Hm = n_features, pos_input_dim, n_layers, 4 * n_features
    ks = jax.random.split(key, 8)
    s = 0.02
    return {
        "masked_token": jnp.ones((F,), dtype),                 # nn.Parameter(ones)
        "wp": s * jax.random.normal(ks[0], (C, F), dtype),
        "bp": jnp.zeros((1, F), dtype),
        "ln1_g": jnp.ones((L, 1, F), dtype),
        "ln1_b": jnp.zeros((L, 1, F), dtype),
        "w_q": s * jax.random.normal(ks[1], (L, F, F), dtype),
        "b_q": jnp.zeros((L, 1, F), dtype),
        "w_k": s * jax.random.normal(ks[2], (L, F, F), dtype),
        "b_k": jnp.zeros((L, 1, F), dtype),
        "w_v": s * jax.random.normal(ks[3], (L, F, F), dtype),
        "b_v": jnp.zeros((L, 1, F), dtype),
        "w_o": s * jax.random.normal(ks[4], (L, F, F), dtype),
        "b_o": jnp.zeros((L, 1, F), dtype),
        "ln2_g": jnp.ones((L, 1, F), dtype),
        "ln2_b": jnp.zeros((L, 1, F), dtype),
        "w1": s * jax.random.normal(ks[5], (L, F, Hm), dtype),
        "b1": jnp.zeros((L, 1, Hm), dtype),
        "w2": s * jax.random.normal(ks[6], (L, Hm, F), dtype),
        "b2": jnp.zeros((L, 1, F), dtype),
    }


def _assemble_full_tokens(params, tokens_unmasked, unmasked_idx, masked_idx):
    """mask-token broadcast + concat + rearrange to full-dataset order."""
    B, N1, F = tokens_unmasked.shape
    N2 = masked_idx.shape[1]
    batch_masked = jnp.broadcast_to(params["masked_token"][None, None, :],
                                    (B, N2, F))
    inter = jnp.concatenate([tokens_unmasked, batch_masked], axis=1)  # (B, N, F)
    rearr = jnp.concatenate([unmasked_idx, masked_idx], axis=1)       # (B, N)
    inv = jnp.argsort(rearr, axis=1)
    return jnp.take_along_axis(inter, inv[..., None], axis=1)         # (B, N, F)


@functools.partial(jax.jit, static_argnames=("n_heads", "batch_tile"))
def mae_branch_transformer_decoder(params, tokens_unmasked, unmasked_idx,
                                   masked_idx, pos_full, *, n_heads, batch_tile):
    """
    tokens_unmasked : (B, N1, F)   unmasked tokens
    unmasked_idx    : (B, N1) int  full-dataset index of each unmasked token
    masked_idx      : (B, N2) int  full-dataset index of each masked token
    pos_full        : (B, N, C)    positional input in full-dataset order (or None)
    returns         : (B, N2, F) float32
    """
    x_full = _assemble_full_tokens(params, tokens_unmasked, unmasked_idx,
                                   masked_idx).astype(jnp.float32)
    # Positional Linear hoisted out of the kernel (XLA fuses this tiny GEMM).
    if pos_full is not None:
        pe = jnp.einsum("bnc,cf->bnf", pos_full.astype(jnp.float32),
                        params["wp"].astype(jnp.float32))
        h_init = x_full + pe + params["bp"].astype(jnp.float32)
    else:
        h_init = x_full
    out_full = run_decoder_transformer(h_init, params,
                                       n_heads=n_heads, batch_tile=batch_tile)
    # batch_index_select of masked tokens -> (B, N2, F)
    sel = jnp.take_along_axis(out_full, masked_idx[..., None], axis=1)
    return sel.astype(jnp.float32)


# ---------------------------- pure-JAX reference ----------------------------- #

def _reference_decoder(params, x_full, pos_full, *, n_heads):
    B, N, F = x_full.shape
    H = n_heads
    dh = F // H
    L = params["w_q"].shape[0]
    scale = 1.0 / float(dh) ** 0.5
    h = x_full + jnp.einsum("bnc,cf->bnf", pos_full, params["wp"]) + params["bp"]
    for l in range(L):
        y = _layernorm(h, params["ln1_g"][l], params["ln1_b"][l])
        q = jnp.einsum("bnf,fg->bng", y, params["w_q"][l]) + params["b_q"][l]
        k = jnp.einsum("bnf,fg->bng", y, params["w_k"][l]) + params["b_k"][l]
        v = jnp.einsum("bnf,fg->bng", y, params["w_v"][l]) + params["b_v"][l]
        q = q.reshape(B, N, H, dh)
        k = k.reshape(B, N, H, dh)
        v = v.reshape(B, N, H, dh)
        s = jnp.einsum("bnhd,bmhd->bhnm", q, k) * scale
        p = jax.nn.softmax(s, axis=-1)
        ctx = jnp.einsum("bhnm,bmhd->bnhd", p, v).reshape(B, N, F)
        attn = jnp.einsum("bnf,fg->bng", ctx, params["w_o"][l]) + params["b_o"][l]
        h = h + attn
        y = _layernorm(h, params["ln2_g"][l], params["ln2_b"][l])
        z = jnp.einsum("bnf,fg->bng", y, params["w1"][l]) + params["b1"][l]
        z = jax.nn.gelu(z, approximate=False)     # torch default (exact erf)
        z = jnp.einsum("bng,gf->bnf", z, params["w2"][l]) + params["b2"][l]
        h = h + z
    return h


# ----------------------------------- main ------------------------------------ #

if __name__ == "__main__":
    B, N1, N2 = 4, 8, 8
    N = N1 + N2
    C = 4            # pos_input_dimension
    F = 32           # n_features
    H = 4            # n_heads
    L = 2            # transformer_sequence_len
    Bt = 2           # batch tile -> grid[0] = 2 so both v7x TensorCores get work

    key = jax.random.PRNGKey(0)
    kp, kt, kpos, kperm = jax.random.split(key, 4)

    params = init_params(kp, pos_input_dim=C, n_layers=L, n_features=F)

    tokens_unmasked = jax.random.normal(kt, (B, N1, F), jnp.float32)
    pos_full = jax.random.normal(kpos, (B, N, C), jnp.float32)

    # deterministic per-batch permutation of full-dataset indices
    perms = jnp.stack([jax.random.permutation(jax.random.fold_in(kperm, b), N)
                       for b in range(B)])
    unmasked_idx = perms[:, :N1].astype(jnp.int32)
    masked_idx = perms[:, N1:].astype(jnp.int32)

    out = mae_branch_transformer_decoder(
        params, tokens_unmasked, unmasked_idx, masked_idx, pos_full,
        n_heads=H, batch_tile=Bt)
    out = jax.block_until_ready(out)
    assert out.shape == (B, N2, F)

    # numerics check against a pure-JAX f32 reference of the same forward pass
    x_full = _assemble_full_tokens(params, tokens_unmasked, unmasked_idx, masked_idx)
    ref_full = _reference_decoder(params, x_full, pos_full, n_heads=H)
    ref = jnp.take_along_axis(ref_full, masked_idx[..., None], axis=1)
    err = float(jnp.max(jnp.abs(out - ref)))
    assert err < 5e-2, f"max abs err {err}"

    print("KERNEL_OK")
</pallas_src>

<mosaic_0001>
module attributes {stable_mosaic.version = 11 : i64} {
  func.func @_decoder_kernel(%arg0: i32, %arg1: i32, %arg2: memref<2x16x32xf32, #tpu.memory_space<vmem>>, %arg3: memref<1x32x96xbf16, #tpu.memory_space<vmem>>, %arg4: memref<1x32x32xbf16, #tpu.memory_space<vmem>>, %arg5: memref<1x32x128xbf16, #tpu.memory_space<vmem>>, %arg6: memref<1x128x32xbf16, #tpu.memory_space<vmem>>, %arg7: memref<1x8x128xf32, #tpu.memory_space<vmem>>, %arg8: memref<2x16x32xbf16, #tpu.memory_space<vmem>>, %arg9: memref<2x16x32xf32, #tpu.memory_space<vmem>>) attributes {dimension_semantics = [#tpu.dimension_semantics<parallel>, #tpu.dimension_semantics<arbitrary>], iteration_bounds = array<i64: 2, 2>, scalar_prefetch = 0 : i64, scratch_operands = 1 : i64, tpu.core_type = #tpu.core_type<tc>, window_params = [{transform_indices = @transform_0, window_bounds = array<i64: 2, 16, 32>}, {transform_indices = @transform_1, window_bounds = array<i64: 1, 32, 96>}, {transform_indices = @transform_2, window_bounds = array<i64: 1, 32, 32>}, {transform_indices = @transform_3, window_bounds = array<i64: 1, 32, 128>}, {transform_indices = @transform_4, window_bounds = array<i64: 1, 128, 32>}, {transform_indices = @transform_5, window_bounds = array<i64: 1, 8, 128>}, {transform_indices = @transform_6, window_bounds = array<i64: 2, 16, 32>}]} {
    %c0_i32 = arith.constant 0 : i32
    %0 = arith.cmpi eq, %arg1, %c0_i32 : i32
    %1 = arith.extui %0 : i1 to i32
    %c0_i32_0 = arith.constant 0 : i32
    %2 = arith.cmpi ne, %1, %c0_i32_0 : i32
    scf.if %2 {
      %c0_43 = arith.constant 0 : index
      %c0_44 = arith.constant 0 : index
      %c0_45 = arith.constant 0 : index
      %176 = vector.load %arg2[%c0_43, %c0_44, %c0_45] : memref<2x16x32xf32, #tpu.memory_space<vmem>>, vector<2x16x32xf32>
      %c0_46 = arith.constant 0 : index
      %c0_47 = arith.constant 0 : index
      %c0_48 = arith.constant 0 : index
      %177 = vector.load %arg9[%c0_46, %c0_47, %c0_48] : memref<2x16x32xf32, #tpu.memory_space<vmem>>, vector<2x16x32xf32>
      tpu.vector_store %arg9[%c0_46, %c0_47, %c0_48], %176 {strides = array<i32>} : memref<2x16x32xf32, #tpu.memory_space<vmem>>, vector<2x16x32xf32>,
    } else {
    }
    %c0 = arith.constant 0 : index
    %c0_1 = arith.constant 0 : index
    %c0_2 = arith.constant 0 : index
    %3 = vector.load %arg9[%c0, %c0_1, %c0_2] : memref<2x16x32xf32, #tpu.memory_space<vmem>>, vector<2x16x32xf32>
    %c0_3 = arith.constant 0 : index
    %c0_4 = arith.constant 0 : index
    %c0_5 = arith.constant 0 : index
    %4 = vector.load %arg7[%c0_3, %c0_4, %c0_5] : memref<1x8x128xf32, #tpu.memory_space<vmem>>, vector<1x8x128xf32>
    %5 = vector.shape_cast %4 : vector<1x8x128xf32> to vector<8x128xf32>
    %6 = vector.extract_strided_slice %5 {offsets = [0, 0], sizes = [1, 32], strides = [1, 1]} : vector<8x128xf32> to vector<1x32xf32>
    %7 = vector.extract_strided_slice %5 {offsets = [1, 0], sizes = [1, 32], strides = [1, 1]} : vector<8x128xf32> to vector<1x32xf32>
    %8 = vector.extract_strided_slice %5 {offsets = [2, 0], sizes = [1, 32], strides = [1, 1]} : vector<8x128xf32> to vector<1x32xf32>
    %9 = vector.extract_strided_slice %5 {offsets = [3, 0], sizes = [1, 32], strides = [1, 1]} : vector<8x128xf32> to vector<1x32xf32>
    %10 = vector.extract_strided_slice %5 {offsets = [4, 0], sizes = [1, 96], strides = [1, 1]} : vector<8x128xf32> to vector<1x96xf32>
    %11 = vector.extract_strided_slice %5 {offsets = [5, 0], sizes = [1, 32], strides = [1, 1]} : vector<8x128xf32> to vector<1x32xf32>
    %12 = vector.extract_strided_slice %5 {offsets = [6, 0], sizes = [1, 128], strides = [1, 1]} : vector<8x128xf32> to vector<1x128xf32>
    %13 = vector.extract_strided_slice %5 {offsets = [7, 0], sizes = [1, 32], strides = [1, 1]} : vector<8x128xf32> to vector<1x32xf32>
    %cst = arith.constant dense<0.000000e+00> : vector<2x16xf32>
    %14 = vector.multi_reduction <add>, %3, %cst [2] : vector<2x16x32xf32> to vector<2x16xf32>
    %15 = vector.shape_cast %14 : vector<2x16xf32> to vector<2x16x1xf32>
    %cst_6 = arith.constant 3.200000e+01 : f32
    %16 = vector.broadcast %cst_6 : f32 to vector<2x16x1xf32>
    %17 = arith.divf %15, %16 : vector<2x16x1xf32>
    %18 = vector.broadcast %17 : vector<2x16x1xf32> to vector<2x16x32xf32>
    %19 = arith.subf %3, %18 : vector<2x16x32xf32>
    %20 = arith.mulf %19, %19 : vector<2x16x32xf32>
    %cst_7 = arith.constant dense<0.000000e+00> : vector<2x16xf32>
    %21 = vector.multi_reduction <add>, %20, %cst_7 [2] : vector<2x16x32xf32> to vector<2x16xf32>
    %22 = vector.shape_cast %21 : vector<2x16xf32> to vector<2x16x1xf32>
    %cst_8 = arith.constant 3.200000e+01 : f32
    %23 = vector.broadcast %cst_8 : f32 to vector<2x16x1xf32>
    %24 = arith.divf %22, %23 : vector<2x16x1xf32>
    %25 = vector.broadcast %17 : vector<2x16x1xf32> to vector<2x16x32xf32>
    %26 = arith.subf %3, %25 : vector<2x16x32xf32>
    %cst_9 = arith.constant 9.99999974E-6 : f32
    %27 = vector.broadcast %cst_9 : f32 to vector<2x16x1xf32>
    %28 = arith.addf %24, %27 : vector<2x16x1xf32>
    %29 = math.rsqrt %28 : vector<2x16x1xf32>
    %30 = vector.broadcast %29 : vector<2x16x1xf32> to vector<2x16x32xf32>
    %31 = arith.mulf %26, %30 : vector<2x16x32xf32>
    %32 = vector.shape_cast %6 : vector<1x32xf32> to vector<1x1x32xf32>
    %33 = vector.broadcast %32 : vector<1x1x32xf32> to vector<2x16x32xf32>
    %34 = arith.mulf %31, %33 : vector<2x16x32xf32>
    %35 = vector.shape_cast %7 : vector<1x32xf32> to vector<1x1x32xf32>
    %36 = vector.broadcast %35 : vector<1x1x32xf32> to vector<2x16x32xf32>
    %37 = arith.addf %34, %36 : vector<2x16x32xf32>
    %38 = vector.shape_cast %37 : vector<2x16x32xf32> to vector<32x32xf32>
    %39 = arith.truncf %38 : vector<32x32xf32> to vector<32x32xbf16>
    %c0_10 = arith.constant 0 : index
    %c0_11 = arith.constant 0 : index
    %c0_12 = arith.constant 0 : index
    %40 = vector.load %arg3[%c0_10, %c0_11, %c0_12] : memref<1x32x96xbf16, #tpu.memory_space<vmem>>, vector<1x32x96xbf16>
    %41 = vector.shape_cast %40 : vector<1x32x96xbf16> to vector<32x96xbf16>
    %cst_13 = arith.constant dense<0.000000e+00> : vector<32x96xf32>
    %42 = tpu.matmul %39, %41, %cst_13 {dimension_numbers = #tpu.dot_dimension_numbers<[1], [0], [0], [1], [0, 0, 1, 1], [], []>} : vector<32x32xbf16>, vector<32x96xbf16>, vector<32x96xf32> -> vector<32x96xf32>
    %43 = vector.broadcast %10 : vector<1x96xf32> to vector<32x96xf32>
    %44 = arith.addf %42, %43 : vector<32x96xf32>
    %45 = arith.truncf %44 : vector<32x96xf32> to vector<32x96xbf16>
    %46 = vector.extract_strided_slice %45 {offsets = [0, 0], sizes = [32, 8], strides = [1, 1]} : vector<32x96xbf16> to vector<32x8xbf16>
    %47 = vector.shape_cast %46 : vector<32x8xbf16> to vector<2x16x8xbf16>
    %48 = vector.extract_strided_slice %45 {offsets = [0, 8], sizes = [32, 8], strides = [1, 1]} : vector<32x96xbf16> to vector<32x8xbf16>
    %49 = vector.shape_cast %48 : vector<32x8xbf16> to vector<2x16x8xbf16>
    %50 = vector.extract_strided_slice %45 {offsets = [0, 16], sizes = [32, 8], strides = [1, 1]} : vector<32x96xbf16> to vector<32x8xbf16>
    %51 = vector.shape_cast %50 : vector<32x8xbf16> to vector<2x16x8xbf16>
    %52 = vector.extract_strided_slice %45 {offsets = [0, 24], sizes = [32, 8], strides = [1, 1]} : vector<32x96xbf16> to vector<32x8xbf16>
    %53 = vector.shape_cast %52 : vector<32x8xbf16> to vector<2x16x8xbf16>
    %54 = vector.shape_cast %47 : vector<2x16x8xbf16> to vector<1x2x16x8xbf16>
    %55 = vector.shape_cast %49 : vector<2x16x8xbf16> to vector<1x2x16x8xbf16>
    %56 = vector.shape_cast %51 : vector<2x16x8xbf16> to vector<1x2x16x8xbf16>
    %57 = vector.shape_cast %53 : vector<2x16x8xbf16> to vector<1x2x16x8xbf16>
    %58 = tpu.concatenate %54, %55, %56, %57 in 0 : vector<1x2x16x8xbf16>, vector<1x2x16x8xbf16>, vector<1x2x16x8xbf16>, vector<1x2x16x8xbf16> -> vector<4x2x16x8xbf16>
    %59 = vector.shape_cast %58 : vector<4x2x16x8xbf16> to vector<8x16x8xbf16>
    %60 = vector.extract_strided_slice %45 {offsets = [0, 32], sizes = [32, 8], strides = [1, 1]} : vector<32x96xbf16> to vector<32x8xbf16>
    %61 = vector.shape_cast %60 : vector<32x8xbf16> to vector<2x16x8xbf16>
    %62 = vector.extract_strided_slice %45 {offsets = [0, 40], sizes = [32, 8], strides = [1, 1]} : vector<32x96xbf16> to vector<32x8xbf16>
    %63 = vector.shape_cast %62 : vector<32x8xbf16> to vector<2x16x8xbf16>
    %64 = vector.extract_strided_slice %45 {offsets = [0, 48], sizes = [32, 8], strides = [1, 1]} : vector<32x96xbf16> to vector<32x8xbf16>
    %65 = vector.shape_cast %64 : vector<32x8xbf16> to vector<2x16x8xbf16>
    %66 = vector.extract_strided_slice %45 {offsets = [0, 56], sizes = [32, 8], strides = [1, 1]} : vector<32x96xbf16> to vector<32x8xbf16>
    %67 = vector.shape_cast %66 : vector<32x8xbf16> to vector<2x16x8xbf16>
    %68 = vector.shape_cast %61 : vector<2x16x8xbf16> to vector<1x2x16x8xbf16>
    %69 = vector.shape_cast %63 : vector<2x16x8xbf16> to vector<1x2x16x8xbf16>
    %70 = vector.shape_cast %65 : vector<2x16x8xbf16> to vector<1x2x16x8xbf16>
    %71 = vector.shape_cast %67 : vector<2x16x8xbf16> to vector<1x2x16x8xbf16>
    %72 = tpu.concatenate %68, %69, %70, %71 in 0 : vector<1x2x16x8xbf16>, vector<1x2x16x8xbf16>, vector<1x2x16x8xbf16>, vector<1x2x16x8xbf16> -> vector<4x2x16x8xbf16>
    %73 = vector.shape_cast %72 : vector<4x2x16x8xbf16> to vector<8x16x8xbf16>
    %74 = vector.extract_strided_slice %45 {offsets = [0, 64], sizes = [32, 8], strides = [1, 1]} : vector<32x96xbf16> to vector<32x8xbf16>
    %75 = vector.shape_cast %74 : vector<32x8xbf16> to vector<2x16x8xbf16>
    %76 = vector.extract_strided_slice %45 {offsets = [0, 72], sizes = [32, 8], strides = [1, 1]} : vector<32x96xbf16> to vector<32x8xbf16>
    %77 = vector.shape_cast %76 : vector<32x8xbf16> to vector<2x16x8xbf16>
    %78 = vector.extract_strided_slice %45 {offsets = [0, 80], sizes = [32, 8], strides = [1, 1]} : vector<32x96xbf16> to vector<32x8xbf16>
    %79 = vector.shape_cast %78 : vector<32x8xbf16> to vector<2x16x8xbf16>
    %80 = vector.extract_strided_slice %45 {offsets = [0, 88], sizes = [32, 8], strides = [1, 1]} : vector<32x96xbf16> to vector<32x8xbf16>
    %81 = vector.shape_cast %80 : vector<32x8xbf16> to vector<2x16x8xbf16>
    %82 = vector.shape_cast %75 : vector<2x16x8xbf16> to vector<1x2x16x8xbf16>
    %83 = vector.shape_cast %77 : vector<2x16x8xbf16> to vector<1x2x16x8xbf16>
    %84 = vector.shape_cast %79 : vector<2x16x8xbf16> to vector<1x2x16x8xbf16>
    %85 = vector.shape_cast %81 : vector<2x16x8xbf16> to vector<1x2x16x8xbf16>
    %86 = tpu.concatenate %82, %83, %84, %85 in 0 : vector<1x2x16x8xbf16>, vector<1x2x16x8xbf16>, vector<1x2x16x8xbf16>, vector<1x2x16x8xbf16> -> vector<4x2x16x8xbf16>
    %87 = vector.shape_cast %86 : vector<4x2x16x8xbf16> to vector<8x16x8xbf16>
    "tpu.trace_start"() <{level = 10 : i32, message = "gnd,gmd->gnm"}> : () -> ()
    %cst_14 = arith.constant dense<0.000000e+00> : vector<8x16x16xf32>
    %88 = tpu.matmul %59, %73, %cst_14 {dimension_numbers = #tpu.dot_dimension_numbers<[2], [2], [1], [1], [0, 0, 0, 1, 1, 1], [0], [0]>} : vector<8x16x8xbf16>, vector<8x16x8xbf16>, vector<8x16x16xf32> -> vector<8x16x16xf32>
    "tpu.trace_stop"() : () -> ()
    %cst_15 = arith.constant dense<0xFF800000> : vector<8x16xf32>
    %89 = vector.multi_reduction <maximumf>, %88, %cst_15 [2] : vector<8x16x16xf32> to vector<8x16xf32>
    %90 = vector.shape_cast %89 : vector<8x16xf32> to vector<8x16x1xf32>
    %91 = vector.broadcast %90 : vector<8x16x1xf32> to vector<8x16x16xf32>
    %92 = arith.subf %88, %91 : vector<8x16x16xf32>
    %93 = math.exp %92 : vector<8x16x16xf32>
    %cst_16 = arith.constant dense<0.000000e+00> : vector<8x16xf32>
    %94 = vector.multi_reduction <add>, %93, %cst_16 [2] : vector<8x16x16xf32> to vector<8x16xf32>
    %95 = vector.shape_cast %94 : vector<8x16xf32> to vector<8x16x1xf32>
    %96 = tpu.reciprocal %95 {approx = true} : vector<8x16x1xf32> -> vector<8x16x1xf32>
    %97 = vector.broadcast %96 : vector<8x16x1xf32> to vector<8x16x16xf32>
    %98 = arith.mulf %93, %97 : vector<8x16x16xf32>
    %99 = arith.truncf %98 : vector<8x16x16xf32> to vector<8x16x16xbf16>
    "tpu.trace_start"() <{level = 10 : i32, message = "gnm,gmd->gnd"}> : () -> ()
    %cst_17 = arith.constant dense<0.000000e+00> : vector<8x16x8xf32>
    %100 = tpu.matmul %99, %87, %cst_17 {dimension_numbers = #tpu.dot_dimension_numbers<[2], [1], [1], [2], [0, 0, 0, 1, 1, 2], [0], [0]>} : vector<8x16x16xbf16>, vector<8x16x8xbf16>, vector<8x16x8xf32> -> vector<8x16x8xf32>
    "tpu.trace_stop"() : () -> ()
    %101 = vector.shape_cast %100 : vector<8x16x8xf32> to vector<4x2x16x8xf32>
    %102 = vector.extract_strided_slice %101 {offsets = [0, 0, 0, 0], sizes = [1, 2, 16, 8], strides = [1, 1, 1, 1]} : vector<4x2x16x8xf32> to vector<1x2x16x8xf32>
    %103 = vector.shape_cast %102 : vector<1x2x16x8xf32> to vector<2x16x8xf32>
    %104 = vector.extract_strided_slice %101 {offsets = [1, 0, 0, 0], sizes = [1, 2, 16, 8], strides = [1, 1, 1, 1]} : vector<4x2x16x8xf32> to vector<1x2x16x8xf32>
    %105 = vector.shape_cast %104 : vector<1x2x16x8xf32> to vector<2x16x8xf32>
    %106 = vector.extract_strided_slice %101 {offsets = [2, 0, 0, 0], sizes = [1, 2, 16, 8], strides = [1, 1, 1, 1]} : vector<4x2x16x8xf32> to vector<1x2x16x8xf32>
    %107 = vector.shape_cast %106 : vector<1x2x16x8xf32> to vector<2x16x8xf32>
    %108 = vector.extract_strided_slice %101 {offsets = [3, 0, 0, 0], sizes = [1, 2, 16, 8], strides = [1, 1, 1, 1]} : vector<4x2x16x8xf32> to vector<1x2x16x8xf32>
    %109 = vector.shape_cast %108 : vector<1x2x16x8xf32> to vector<2x16x8xf32>
    %110 = tpu.concatenate %103, %105, %107, %109 in 2 : vector<2x16x8xf32>, vector<2x16x8xf32>, vector<2x16x8xf32>, vector<2x16x8xf32> -> vector<2x16x32xf32>
    %111 = vector.shape_cast %110 : vector<2x16x32xf32> to vector<32x32xf32>
    %112 = arith.truncf %111 : vector<32x32xf32> to vector<32x32xbf16>
    %c0_18 = arith.constant 0 : index
    %c0_19 = arith.constant 0 : index
    %c0_20 = arith.constant 0 : index
    %113 = vector.load %arg4[%c0_18, %c0_19, %c0_20] : memref<1x32x32xbf16, #tpu.memory_space<vmem>>, vector<1x32x32xbf16>
    %114 = vector.shape_cast %113 : vector<1x32x32xbf16> to vector<32x32xbf16>
    %cst_21 = arith.constant dense<0.000000e+00> : vector<32x32xf32>
    %115 = tpu.matmul %112, %114, %cst_21 {dimension_numbers = #tpu.dot_dimension_numbers<[1], [0], [0], [1], [0, 0, 1, 1], [], []>} : vector<32x32xbf16>, vector<32x32xbf16>, vector<32x32xf32> -> vector<32x32xf32>
    %116 = vector.broadcast %11 : vector<1x32xf32> to vector<32x32xf32>
    %117 = arith.addf %115, %116 : vector<32x32xf32>
    %118 = vector.shape_cast %117 : vector<32x32xf32> to vector<2x16x32xf32>
    %119 = arith.addf %3, %118 : vector<2x16x32xf32>
    %cst_22 = arith.constant dense<0.000000e+00> : vector<2x16xf32>
    %120 = vector.multi_reduction <add>, %119, %cst_22 [2] : vector<2x16x32xf32> to vector<2x16xf32>
    %121 = vector.shape_cast %120 : vector<2x16xf32> to vector<2x16x1xf32>
    %cst_23 = arith.constant 3.200000e+01 : f32
    %122 = vector.broadcast %cst_23 : f32 to vector<2x16x1xf32>
    %123 = arith.divf %121, %122 : vector<2x16x1xf32>
    %124 = vector.broadcast %123 : vector<2x16x1xf32> to vector<2x16x32xf32>
    %125 = arith.subf %119, %124 : vector<2x16x32xf32>
    %126 = arith.mulf %125, %125 : vector<2x16x32xf32>
    %cst_24 = arith.constant dense<0.000000e+00> : vector<2x16xf32>
    %127 = vector.multi_reduction <add>, %126, %cst_24 [2] : vector<2x16x32xf32> to vector<2x16xf32>
    %128 = vector.shape_cast %127 : vector<2x16xf32> to vector<2x16x1xf32>
    %cst_25 = arith.constant 3.200000e+01 : f32
    %129 = vector.broadcast %cst_25 : f32 to vector<2x16x1xf32>
    %130 = arith.divf %128, %129 : vector<2x16x1xf32>
    %131 = vector.broadcast %123 : vector<2x16x1xf32> to vector<2x16x32xf32>
    %132 = arith.subf %119, %131 : vector<2x16x32xf32>
    %cst_26 = arith.constant 9.99999974E-6 : f32
    %133 = vector.broadcast %cst_26 : f32 to vector<2x16x1xf32>
    %134 = arith.addf %130, %133 : vector<2x16x1xf32>
    %135 = math.rsqrt %134 : vector<2x16x1xf32>
    %136 = vector.broadcast %135 : vector<2x16x1xf32> to vector<2x16x32xf32>
    %137 = arith.mulf %132, %136 : vector<2x16x32xf32>
    %138 = vector.shape_cast %8 : vector<1x32xf32> to vector<1x1x32xf32>
    %139 = vector.broadcast %138 : vector<1x1x32xf32> to vector<2x16x32xf32>
    %140 = arith.mulf %137, %139 : vector<2x16x32xf32>
    %141 = vector.shape_cast %9 : vector<1x32xf32> to vector<1x1x32xf32>
    %142 = vector.broadcast %141 : vector<1x1x32xf32> to vector<2x16x32xf32>
    %143 = arith.addf %140, %142 : vector<2x16x32xf32>
    %144 = vector.shape_cast %143 : vector<2x16x32xf32> to vector<32x32xf32>
    %145 = arith.truncf %144 : vector<32x32xf32> to vector<32x32xbf16>
    %c0_27 = arith.constant 0 : index
    %c0_28 = arith.constant 0 : index
    %c0_29 = arith.constant 0 : index
    %146 = vector.load %arg5[%c0_27, %c0_28, %c0_29] : memref<1x32x128xbf16, #tpu.memory_space<vmem>>, vector<1x32x128xbf16>
    %147 = vector.shape_cast %146 : vector<1x32x128xbf16> to vector<32x128xbf16>
    %cst_30 = arith.constant dense<0.000000e+00> : vector<32x128xf32>
    %148 = tpu.matmul %145, %147, %cst_30 {dimension_numbers = #tpu.dot_dimension_numbers<[1], [0], [0], [1], [0, 0, 1, 1], [], []>} : vector<32x32xbf16>, vector<32x128xbf16>, vector<32x128xf32> -> vector<32x128xf32>
    %149 = vector.broadcast %12 : vector<1x128xf32> to vector<32x128xf32>
    %150 = arith.addf %148, %149 : vector<32x128xf32>
    %151 = arith.mulf %150, %150 : vector<32x128xf32>
    %152 = arith.mulf %150, %151 : vector<32x128xf32>
    %cst_31 = arith.constant 4.471500e-02 : f32
    %153 = vector.broadcast %cst_31 : f32 to vector<32x128xf32>
    %154 = arith.mulf %153, %152 : vector<32x128xf32>
    %155 = arith.addf %150, %154 : vector<32x128xf32>
    %cst_32 = arith.constant 0.797884583 : f32
    %156 = vector.broadcast %cst_32 : f32 to vector<32x128xf32>
    %157 = arith.mulf %156, %155 : vector<32x128xf32>
    %158 = math.tanh %157 : vector<32x128xf32>
    %cst_33 = arith.constant 1.000000e+00 : f32
    %159 = vector.broadcast %cst_33 : f32 to vector<32x128xf32>
    %160 = arith.addf %159, %158 : vector<32x128xf32>
    %cst_34 = arith.constant 5.000000e-01 : f32
    %161 = vector.broadcast %cst_34 : f32 to vector<32x128xf32>
    %162 = arith.mulf %161, %160 : vector<32x128xf32>
    %163 = arith.mulf %150, %162 : vector<32x128xf32>
    %164 = arith.truncf %163 : vector<32x128xf32> to vector<32x128xbf16>
    %c0_35 = arith.constant 0 : index
    %c0_36 = arith.constant 0 : index
    %c0_37 = arith.constant 0 : index
    %165 = vector.load %arg6[%c0_35, %c0_36, %c0_37] : memref<1x128x32xbf16, #tpu.memory_space<vmem>>, vector<1x128x32xbf16>
    %166 = vector.shape_cast %165 : vector<1x128x32xbf16> to vector<128x32xbf16>
    %cst_38 = arith.constant dense<0.000000e+00> : vector<32x32xf32>
    %167 = tpu.matmul %164, %166, %cst_38 {dimension_numbers = #tpu.dot_dimension_numbers<[1], [0], [0], [1], [0, 0, 1, 1], [], []>} : vector<32x128xbf16>, vector<128x32xbf16>, vector<32x32xf32> -> vector<32x32xf32>
    %168 = vector.broadcast %13 : vector<1x32xf32> to vector<32x32xf32>
    %169 = arith.addf %167, %168 : vector<32x32xf32>
    %170 = vector.shape_cast %169 : vector<32x32xf32> to vector<2x16x32xf32>
    %171 = arith.addf %119, %170 : vector<2x16x32xf32>
    %c0_39 = arith.constant 0 : index
    %c0_40 = arith.constant 0 : index
    %c0_41 = arith.constant 0 : index
    %172 = vector.load %arg9[%c0_39, %c0_40, %c0_41] : memref<2x16x32xf32, #tpu.memory_space<vmem>>, vector<2x16x32xf32>
    tpu.vector_store %arg9[%c0_39, %c0_40, %c0_41], %171 {strides = array<i32>} : memref<2x16x32xf32, #tpu.memory_space<vmem>>, vector<2x16x32xf32>,
    %c1_i32 = arith.constant 1 : i32
    %173 = arith.cmpi eq, %arg1, %c1_i32 : i32
    %174 = arith.extui %173 : i1 to i32
    %c0_i32_42 = arith.constant 0 : i32
    %175 = arith.cmpi ne, %174, %c0_i32_42 : i32
    scf.if %175 {
      %176 = arith.truncf %171 : vector<2x16x32xf32> to vector<2x16x32xbf16>
      %c0_43 = arith.constant 0 : index
      %c0_44 = arith.constant 0 : index
      %c0_45 = arith.constant 0 : index
      %177 = vector.load %arg8[%c0_43, %c0_44, %c0_45] : memref<2x16x32xbf16, #tpu.memory_space<vmem>>, vector<2x16x32xbf16>
      tpu.vector_store %arg8[%c0_43, %c0_44, %c0_45], %176 {strides = array<i32>} : memref<2x16x32xbf16, #tpu.memory_space<vmem>>, vector<2x16x32xbf16>,
    } else {
    }
    return
  }
  func.func @transform_0(%arg0: i32, %arg1: i32) -> (i32, i32, i32) {
    %c0_i32 = arith.constant 0 : i32
    %c0_i32_0 = arith.constant 0 : i32
    %c0_i32_1 = arith.constant 0 : i32
    return %arg0, %c0_i32, %c0_i32_0 : i32, i32, i32
  }
  func.func @transform_1(%arg0: i32, %arg1: i32) -> (i32, i32, i32) {
    %c0_i32 = arith.constant 0 : i32
    %c0_i32_0 = arith.constant 0 : i32
    %c0_i32_1 = arith.constant 0 : i32
    return %arg1, %c0_i32, %c0_i32_0 : i32, i32, i32
  }
  func.func @transform_2(%arg0: i32, %arg1: i32) -> (i32, i32, i32) {
    %c0_i32 = arith.constant 0 : i32
    %c0_i32_0 = arith.constant 0 : i32
    %c0_i32_1 = arith.constant 0 : i32
    return %arg1, %c0_i32, %c0_i32_0 : i32, i32, i32
  }
  func.func @transform_3(%arg0: i32, %arg1: i32) -> (i32, i32, i32) {
    %c0_i32 = arith.constant 0 : i32
    %c0_i32_0 = arith.constant 0 : i32
    %c0_i32_1 = arith.constant 0 : i32
    return %arg1, %c0_i32, %c0_i32_0 : i32, i32, i32
  }
  func.func @transform_4(%arg0: i32, %arg1: i32) -> (i32, i32, i32) {
    %c0_i32 = arith.constant 0 : i32
    %c0_i32_0 = arith.constant 0 : i32
    %c0_i32_1 = arith.constant 0 : i32
    return %arg1, %c0_i32, %c0_i32_0 : i32, i32, i32
  }
  func.func @transform_5(%arg0: i32, %arg1: i32) -> (i32, i32, i32) {
    %c0_i32 = arith.constant 0 : i32
    %c0_i32_0 = arith.constant 0 : i32
    %c0_i32_1 = arith.constant 0 : i32
    return %arg1, %c0_i32, %c0_i32_0 : i32, i32, i32
  }
  func.func @transform_6(%arg0: i32, %arg1: i32) -> (i32, i32, i32) {
    %c0_i32 = arith.constant 0 : i32
    %c0_i32_0 = arith.constant 0 : i32
    %c0_i32_1 = arith.constant 0 : i32
    return %arg0, %c0_i32, %c0_i32_0 : i32, i32, i32
  }
}

</mosaic_0001>

<bundles_post_ra>
// kernel: mae_branch_transformer_decoder.1
= control target key start
LH: loop header
LB: loop body
LE: loop exit
PB: predicated region body
PF: predicated region fallthrough
CT: control target
= control target key end

     0   :  { %s2068_s21 = smov 0   ;;  %s2070_s22 = smov 0   ;;  %s2484_s0 = inlined_call_operand.vmem [shape: f32[4,16,32], index: 0, kind: input, shape index: {}]   ;;  %s2485_s1 = inlined_call_operand.vmem [shape: bf16[2,32,96], index: 1, kind: input, shape index: {}]   ;;  %s2486_s2 = inlined_call_operand.vmem [shape: bf16[2,32,32], index: 2, kind: input, shape index: {}]   ;;  %s2487_s3 = inlined_call_operand.vmem [shape: bf16[2,32,128], index: 3, kind: input, shape index: {}]   ;;  %s2488_s4 = inlined_call_operand.vmem [shape: bf16[2,128,32], index: 4, kind: input, shape index: {}]   ;;  %s2489_s5 = inlined_call_operand.vmem [shape: f32[2,8,128], index: 5, kind: input, shape index: {}]   ;;  %s2490_s6 = inlined_call_operand.vmem [shape: bf16[4,16,32], index: 6, kind: output, shape index: {}]  }
   0x1   :  { %2491 = sst [smem:[#allocation5_spill]] %s2485_s1  ;;  %s2072_s23 = smov 0  }
   0x2   :  { %s2074_s24 = smov 0   ;;  %s2076_s25 = smov 0  }
   0x3 LB: > { %s25_s26 = sadd.s32 1, %s2014_s23  ;;  %s28_s27 = sadd.s32 1, %s2018_s24  ;;  %s2022_s25 = sphi %s2076_s25, %s16_s25   ;;  %s2018_s24 = sphi %s2074_s24, %s2500_s24   ;;  %s2014_s23 = sphi %s2072_s23, %s2499_s23   ;;  %s2010_s22 = sphi %s2070_s22, %s2498_s22   ;;  %s2006_s21 = sphi %s2068_s21, %s2497_s21  }
   0x4   : > { %p26_p0 = scmp.ge.s32.totalorder %s25_s26, 2  ;;  %p1692_p1 = scmp.ge.s32.totalorder %s2022_s25, 1 }
   0x5   : > { %p275_p2 = scmp.lt.s32.totalorder %s2022_s25, 5 }
   0x6   : > { %s2502_s26 = smov (%p26_p0, %s25_s26), 0  ;;  %s2504_s27 = smov (!%p26_p0, %s28_s27), %s2018_s24 }
   0x7   : > { %2492 = sst [smem:[#allocation3_spill]] %s2502_s26  ;;  %p276_p3 = pnand %p1692_p1, %p275_p2 }
   0x8   : > { %p30_p4 = scmp.ge.s32.totalorder %s2504_s27, 2  ;;  %s1693_s28 = sshll.u32 (!%p276_p3), %s2010_s22, 1 }
   0x9   : > { %279 = sbr.rel (%p276_p3) target bundleno = 2190 (0x88e), region = 44  ;;  %p338_p5 = scmp.lt.s32.totalorder (!%p276_p3), %s2006_s21, 1 }
   0xa   : > { %s2506_s27 = smov (%p30_p4, %s2504_s27), 0  ;;  %p332_p6 = scmp.lt.s32.totalorder (!%p276_p3), %s1693_s28, 3 }
   0xb   : > { %2493 = sst [smem:[#allocation4_spill]] %s2506_s27  ;;  %p1708_p7 = scmp.ne.s32.totalorder (!%p276_p3), %s2006_s21, 0 }
   0xc   : > { %s2494_s1 = sld [smem:[#allocation5_spill]] (!%p276_p3) }
   0xe   : > { %s339_s29 = scalar_select %p338_p5, %s2006_s21, 1 }
   0xf   : > { %s2508_s28 = smov (!%p332_p6, %s1693_s28), 3 }
  0x10   : > { %s1791_s30 = sshll.u32 %s339_s29, 4  ;;  %s1794_s7 = sshll.u32 %s339_s29, 6 }
  0x11   : > { %s1790_s8 = sshll.u32 %s2508_s28, 4  ;;  %s2113_s17 = scalar_lea.vmem %s2486_s2, %s1791_s30 }
  0x12   : > { %s2105_s11 = scalar_lea.vmem %s2494_s1, %s1791_s30  ;;  %s336_s14 = scalar_lea.vmem %s2484_s0, %s1790_s8 }
  0x13   : > { %s2118_s20 = scalar_lea.vmem %s2487_s3, %s1791_s30  ;;  %s2123_s9 = scalar_lea.vmem %s2488_s4, %s1794_s7 }
  0x14   : > { %s1704_s10 = sshll.u32 %s339_s29, 3  ;;  %s1795_s1 = sshll.u32 %s2508_s28, 3 }
  0x15   : > { %s2128_s8 = scalar_lea.vmem %s2489_s5, %s1704_s10  ;;  %s2133_s16 = scalar_lea.vmem %s2490_s6, %s1795_s1 }
  0x16   : > { %373 = sbr.rel (%p1708_p7) target bundleno = 32 (0x20), region = 48 }
  0x1b   : > { %v374_v0 = vld [vmem:[%s336_s14] sm:$0xff]  ;;  %vm378_vm0 = vcmask 261120   ;;  %v375_v1 = vld [vmem:[%s336_s14 + $0x8] sm:$0xff]  ;;  %v376_v2 = vld [vmem:[%s336_s14 + $0x10] sm:$0xff] }
  0x1c   : > { %379 = vst.msk [vmem:[#allocation2] sm:$0xff] %vm378_vm0, %v374_v0  ;;  %v377_v3 = vld [vmem:[%s336_s14 + $0x18] sm:$0xff] }
  0x1d   : > { %380 = vst.msk [vmem:[#allocation2 + $0x8] sm:$0xff] %vm378_vm0, %v375_v1 }
  0x1e   : > { %381 = vst.msk [vmem:[#allocation2 + $0x10] sm:$0xff] %vm378_vm0, %v376_v2 }
  0x1f   : > { %382 = vst.msk [vmem:[#allocation2 + $0x18] sm:$0xff] %vm378_vm0, %v377_v3 }
  0x20 PF: > { %vm388_vm1 = vcmask 261120   ;;  %v2024_v12 = vmov 32.0   ;;  %v1797_v39 = vld [vmem:[%s2105_s11 + $0x8] sm:$0xff]  ;;  %v1796_v43 = vld [vmem:[%s2105_s11] sm:$0xff]  ;;  %s2025_s1 = smov 112   ;;  %s2026_s26 = smov 120  }
  0x21   : > { %1889 = vrcp.f32 %v2024_v12  ;;  %525 = vmatpush.bf16.msra.mxu1 %v1797_v39  ;;  %s2027_s27 = smov 104   ;;  %s2028_s28 = smov 96   ;;  %vm575_vm15 = vcmask 64512   ;;  %vm771_vm0 = vcmask 130048  }
  0x22   : > { %s2029_s29 = smov 64   ;;  %s2030_s30 = smov 8  }
  0x23   : > { %v383_v5 = vld [vmem:[#allocation2] sm:$0xff]  ;;  %s2031_s7 = smov 16   ;;  %s2032_s11 = smov 24  }
  0x24   : > { %v389_v7 = vsel %vm388_vm1, %v383_v5, 0.0  ;;  %v384_v9 = vld [vmem:[#allocation2 + $0x8] sm:$0xff]  ;;  %p1787_p8 = scmp.ne.s32.totalorder %s2006_s21, 1 }
  0x25   : > { %v385_v4 = vld [vmem:[#allocation2 + $0x10] sm:$0xff]  ;;  %390 = vadd.xlane.f32.xlu0 %v389_v7  ;;  %v392_v11 = vsel %vm388_vm1, %v384_v9, 0.0  ;;  %526 = vmatpush.bf16.msra.mxu1 %v1796_v43 }
  0x26   : > { %v395_v6 = vsel %vm388_vm1, %v385_v4, 0.0  ;;  %v386_v8 = vld [vmem:[#allocation2 + $0x18] sm:$0xff] }
  0x27   : > { %396 = vadd.xlane.f32.xlu1 %v395_v6  ;;  %v398_v10 = vsel %vm388_vm1, %v386_v8, 0.0  ;;  %v1890_v13 = vpop.eup %1889  ;;  %v387_v6 = vld [vmem:[%s2128_s8] sm:$0xff] }
  0x28   : > { %v402_v14 = vmul.f32 32.0, %v1890_v13  ;;  %vm406_vm2 = vweird.f32 %v1890_v13 }
  0x2a   : > { %v403_v15 = vsub.f32 1.0, %v402_v14 }
  0x2c   : > { %v404_v16 = vmul.f32 %v1890_v13, %v403_v15 }
  0x2d   : > { %393 = vadd.xlane.f32.xlu0 %v392_v11 }
  0x2e   : > { %v405_v17 = vadd.f32 %v1890_v13, %v404_v16 }
  0x2f   : > { %399 = vadd.xlane.f32.xlu1 %v398_v10  ;;  %v484_v10 = vperm.slane %v387_v6, 0 }
  0x30   : > { %v2140_v18 = vsel %vm406_vm2, %v1890_v13, %v405_v17  ;;  %v489_v17 = vperm.slane %v387_v6, 1  ;;  %vm1220_vm2 = vcmask 195584  }
  0x98   : > { %v391_v20 = vpop.xlane.xlu0 %390 }
  0x99   : > { %v408_v22 = vmul.f32 %v2140_v18, %v391_v20 }
  0x9a   : > { %v397_v19 = vpop.xlane.xlu1 %396 }
  0x9b   : > { %v410_v21 = vmul.f32 %v2140_v18, %v397_v19  ;;  %v2146_v24 = vsub.f32 %v383_v5, %v408_v22 }
  0x9d   : > { %v2144_v23 = vsub.f32 %v385_v4, %v410_v21  ;;  %v416_v26 = vmul.f32 %v2146_v24, %v2146_v24 }
  0x9f   : > { %v418_v25 = vmul.f32 %v2144_v23, %v2144_v23  ;;  %v420_v28 = vsel %vm388_vm1, %v416_v26, 0.0 }
  0xa0   : > { %421 = vadd.xlane.f32.xlu2 %v420_v28  ;;  %v394_v30 = vpop.xlane.xlu0 %393 }
  0xa1   : > { %v426_v27 = vsel %vm388_vm1, %v418_v25, 0.0  ;;  %v409_v32 = vmul.f32 %v2140_v18, %v394_v30 }
  0xa2   : > { %v400_v29 = vpop.xlane.xlu1 %399  ;;  %427 = vadd.xlane.f32.xlu0 %v426_v27 }
  0xa3   : > { %v411_v31 = vmul.f32 %v2140_v18, %v400_v29  ;;  %v413_v34 = vsub.f32 %v384_v9, %v409_v32 }
  0xa5   : > { %v2156_v33 = vsub.f32 %v386_v8, %v411_v31  ;;  %v417_v36 = vmul.f32 %v413_v34, %v413_v34 }
  0xa7   : > { %v419_v35 = vmul.f32 %v2156_v33, %v2156_v33  ;;  %v423_v38 = vsel %vm388_vm1, %v417_v36, 0.0 }
  0xa8   : > { %424 = vadd.xlane.f32.xlu2 %v423_v38 }
  0xa9   : > { %v429_v37 = vsel %vm388_vm1, %v419_v35, 0.0 }
  0xaa   : > { %430 = vadd.xlane.f32.xlu1 %v429_v37  ;;  %v500_v37 = vperm.slane %v387_v6, 4 }
 0x113   : > { %v422_v40 = vpop.xlane.xlu2 %421 }
 0x114   : > { %v432_v41 = vmul.f32 %v422_v40, %v2140_v18 }
 0x115   : > { %v428_v42 = vpop.xlane.xlu0 %427 }
 0x116   : > { %v436_v44 = vadd.f32 1e-05, %v432_v41  ;;  %v434_v45 = vmul.f32 %v428_v42, %v2140_v18 }
 0x118   : > { %1891 = vrsqrt.f32 %v436_v44  ;;  %v438_v46 = vadd.f32 1e-05, %v434_v45  ;;  %vm446_vm4 = vweird.f32 %v436_v44 }
 0x11a   : > { %1893 = vrsqrt.f32 %v438_v46  ;;  %vm466_vm11 = vweird.f32 %v438_v46 }
 0x11b   : > { %v425_v48 = vpop.xlane.xlu2 %424 }
 0x11c   : > { %v433_v50 = vmul.f32 %v425_v48, %v2140_v18 }
 0x11d   : > { %v431_v47 = vpop.xlane.xlu1 %430 }
 0x11e   : > { %v435_v49 = vmul.f32 %v431_v47, %v2140_v18  ;;  %v1892_v51 = vpop.eup %1891  ;;  %v437_v53 = vadd.f32 1e-05, %v433_v50 }
 0x11f   : > { %v441_v54 = vmul.f32 %v1892_v51, %v436_v44  ;;  %vm447_vm3 = vweird.f32 %v1892_v51 }
 0x120   : > { %v439_v52 = vadd.f32 1e-05, %v435_v49  ;;  %v1894_v57 = vpop.eup %1893  ;;  %vm448_vm5 = vmor %vm446_vm4, %vm447_vm3  ;;  %vm456_vm7 = vweird.f32 %v437_v53 }
 0x121   : > { %v442_v55 = vmul.f32 %v1892_v51, %v441_v54  ;;  %v461_v63 = vmul.f32 %v1894_v57, %v438_v46  ;;  %vm467_vm12 = vweird.f32 %v1894_v57 }
 0x122   : > { %1895 = vrsqrt.f32 %v439_v52  ;;  %vm476_vm9 = vweird.f32 %v439_v52  ;;  %vm468_vm14 = vmor %vm466_vm11, %vm467_vm12 }
 0x123   : > { %1897 = vrsqrt.f32 %v437_v53  ;;  %v443_v56 = vmul.f32 0.5, %v442_v55  ;;  %v462_v4 = vmul.f32 %v1894_v57, %v461_v63 }
 0x125   : > { %v444_v58 = vsub.f32 1.5, %v443_v56  ;;  %v463_v11 = vmul.f32 0.5, %v462_v4 }
 0x127   : > { %v445_v62 = vmul.f32 %v1892_v51, %v444_v58  ;;  %v464_v19 = vsub.f32 1.5, %v463_v11 }
 0x128   : > { %v1896_v59 = vpop.eup %1895 }
 0x129   : > { %v1898_v60 = vpop.eup %1897  ;;  %v471_v61 = vmul.f32 %v1896_v59, %v439_v52  ;;  %v449_v3 = vsel %vm448_vm5, %v1892_v51, %v445_v62  ;;  %vm477_vm10 = vweird.f32 %v1896_v59  ;;  %v465_v25 = vmul.f32 %v1894_v57, %v464_v19 }
 0x12a   : > { %v451_v0 = vmul.f32 %v1898_v60, %v437_v53  ;;  %vm457_vm6 = vweird.f32 %v1898_v60  ;;  %v480_v9 = vmul.f32 %v449_v3, %v2146_v24  ;;  %vm478_vm13 = vmor %vm476_vm9, %vm477_vm10 }
 0x12b   : > { %v472_v1 = vmul.f32 %v1896_v59, %v471_v61  ;;  %vm458_vm8 = vmor %vm456_vm7, %vm457_vm6  ;;  %v469_v28 = vsel %vm468_vm14, %v1894_v57, %v465_v25 }
 0x12c   : > { %v452_v2 = vmul.f32 %v1898_v60, %v451_v0  ;;  %v485_v16 = vmul.f32 %v484_v10, %v480_v9  ;;  %v482_v30 = vmul.f32 %v469_v28, %v2144_v23 }
 0x12d   : > { %v473_v7 = vmul.f32 0.5, %v472_v1 }
 0x12e   : > { %v453_v5 = vmul.f32 0.5, %v452_v2  ;;  %v490_v22 = vadd.f32 %v489_v17, %v485_v16  ;;  %v487_v32 = vmul.f32 %v484_v10, %v482_v30 }
 0x12f   : > { %v474_v13 = vsub.f32 1.5, %v473_v7 }
 0x130   : > { %v454_v8 = vsub.f32 1.5, %v453_v5  ;;  %v492_v35 = vadd.f32 %v489_v17, %v487_v32 }
 0x131   : > { %v475_v21 = vmul.f32 %v1896_v59, %v474_v13 }
 0x132   : > { %v455_v12 = vmul.f32 %v1898_v60, %v454_v8 }
 0x133   : > { %v479_v27 = vsel %vm478_vm13, %v1896_v59, %v475_v21 }
 0x134   : > { %v459_v14 = vsel %vm458_vm8, %v1898_v60, %v455_v12  ;;  %v483_v29 = vmul.f32 %v479_v27, %v2156_v33 }
 0x135   : > { %v481_v15 = vmul.f32 %v459_v14, %v413_v34 }
 0x136   : > { %v488_v31 = vmul.f32 %v484_v10, %v483_v29 }
 0x137   : > { %v486_v20 = vmul.f32 %v484_v10, %v481_v15 }
 0x138   : > { %v493_v34 = vadd.f32 %v489_v17, %v488_v31 }
 0x139   : > { %v491_v24 = vadd.f32 %v489_v17, %v486_v20 }
 0x13a   : > { %v495_v36 = vpack.c.bf16 %v493_v34, %v492_v35 }
 0x13b   : > { %v494_v26 = vpack.c.bf16 %v491_v24, %v490_v22 }
 0x13d   : > { %1717 = vmatmul.msk.bf16.vlgmr.msra.gmra.mxu1 %vm388_vm1, %v494_v26 }
 0x14d   : > { %1718 = vmatmul.msk.bf16.gmra.mxu1 %vm388_vm1, %v495_v36 }
 0x1ba   : > { %v528_v38 = vpop.f32.mrf.mxu1 }
 0x1bb   : > { %v529_v39 = vadd.f32 %v528_v38, %v500_v37 }
 0x1bd   : > { %v538_v40 = vpack.c.bf16 %v529_v39, %v529_v39 }
 0x1bf   : > { %554 = vrot.lane.b32.xlu1 %v538_v40, %s2025_s1  ;;  %546 = vrot.lane.b32.xlu2 %v538_v40, %s2026_s26  ;;  %v570_v52 = vunpack.c.l.b16 %v538_v40 }
 0x1c2   : > { %v530_v41 = vpop.f32.mrf.mxu1 }
 0x1c3   : > { %v531_v42 = vadd.f32 %v530_v41, %v500_v37 }
 0x1c5   : > { %v539_v33 = vpack.c.bf16 %v531_v42, %v531_v42 }
 0x1c7   : > { %548 = vrot.lane.b32.xlu0 %v539_v33, %s2026_s26  ;;  %562 = vrot.lane.b32.xlu1 %v538_v40, %s2027_s27  ;;  %v571_v51 = vunpack.c.l.b16 %v539_v33 }
 0x1c8   : > { %556 = vrot.lane.b32.xlu2 %v539_v33, %s2025_s1 }
 0x1c9   : > { %v572_v53 = vpack.c.b16 %v571_v51, %v570_v52 }
 0x1ca   : > { %v533_v23 = vpop.f32.mrf.mxu1 }
 0x1cb   : > { %v534_v43 = vadd.f32 %v533_v23, %v500_v37 }
 0x1cd   : > { %v540_v44 = vpack.c.bf16 %v534_v43, %v534_v43 }
 0x1cf   : > { %550 = vrot.lane.b32.xlu0 %v540_v44, %s2026_s26  ;;  %v596_v49 = vunpack.c.l.b16 %v540_v44 }
 0x1d2   : > { %v535_v45 = vpop.f32.mrf.mxu1 }
 0x1d3   : > { %v536_v46 = vadd.f32 %v535_v45, %v500_v37 }
 0x1d5   : > { %v541_v47 = vpack.c.bf16 %v536_v46, %v536_v46 }
 0x1d7   : > { %560 = vrot.lane.b32.xlu1 %v541_v47, %s2025_s1  ;;  %552 = vrot.lane.b32.xlu2 %v541_v47, %s2026_s26  ;;  %v597_v48 = vunpack.c.l.b16 %v541_v47 }
 0x1d8   : > { %564 = vrot.lane.b32.xlu0 %v539_v33, %s2027_s27 }
 0x1d9   : > { %v598_v50 = vpack.c.b16 %v597_v48, %v596_v49 }
 0x1df   : > { %568 = vrot.lane.b32.xlu1 %v541_v47, %s2027_s27  ;;  %558 = vrot.lane.b32.xlu2 %v540_v44, %s2025_s1 }
 0x1e0   : > { %599 = vrot.lane.b32.xlu0 %v598_v50, %s2028_s28 }
 0x1e7   : > { %566 = vrot.lane.b32.xlu2 %v540_v44, %s2027_s27 }
 0x1e8   : > { %573 = vrot.lane.b32.xlu0 %v572_v53, %s2028_s28 }
 0x219   : > { %v547_v54 = vpop.permute.xlu2 %546 }
 0x21a   : > { %v621_v61 = vunpack.c.l.b16 %v547_v54 }
 0x222   : > { %v557_v55 = vpop.permute.xlu2 %556 }
 0x223   : > { %v672_v57 = vunpack.c.l.b16 %v557_v55 }
 0x231   : > { %v555_v56 = vpop.permute.xlu1 %554  ;;  %v553_v62 = vpop.permute.xlu2 %552 }
 0x232   : > { %v671_v58 = vunpack.c.l.b16 %v555_v56  ;;  %v647_v3 = vunpack.c.l.b16 %v553_v62 }
 0x234   : > { %v673_v59 = vpack.c.b16 %v672_v57, %v671_v58 }
 0x236   : > { %674 = vrot.lane.b32.xlu1 %v673_v59, %s2028_s28 }
 0x239   : > { %v549_v60 = vpop.permute.xlu0 %548  ;;  %v563_v1 = vpop.permute.xlu1 %562 }
 0x23a   : > { %v622_v63 = vunpack.c.l.b16 %v549_v60  ;;  %v559_v5 = vpop.permute.xlu2 %558  ;;  %v721_v11 = vunpack.c.l.b16 %v563_v1 }
 0x23b   : > { %v696_v8 = vunpack.c.l.b16 %v559_v5 }
 0x23c   : > { %v623_v0 = vpack.c.b16 %v622_v63, %v621_v61 }
 0x23e   : > { %624 = vrot.lane.b32.xlu2 %v623_v0, %s2028_s28 }
 0x241   : > { %v551_v2 = vpop.permute.xlu0 %550 }
 0x242   : > { %v646_v4 = vunpack.c.l.b16 %v551_v2  ;;  %v567_v15 = vpop.permute.xlu2 %566 }
 0x243   : > { %v746_v17 = vunpack.c.l.b16 %v567_v15 }
 0x244   : > { %v2178_v6 = vpack.c.b16 %v647_v3, %v646_v4 }
 0x246   : > { %649 = vrot.lane.b32.xlu0 %v2178_v6, %s2028_s28 }
 0x249   : > { %v561_v7 = vpop.permute.xlu1 %560 }
 0x24a   : > { %v697_v9 = vunpack.c.l.b16 %v561_v7  ;;  %v565_v10 = vpop.permute.xlu0 %564 }
 0x24b   : > { %v722_v12 = vunpack.c.l.b16 %v565_v10 }
 0x24c   : > { %v2182_v13 = vpack.c.b16 %v697_v9, %v696_v8 }
 0x24d   : > { %v2184_v14 = vpack.c.b16 %v722_v12, %v721_v11 }
 0x24e   : > { %699 = vrot.lane.b32.xlu1 %v2182_v13, %s2028_s28 }
 0x24f   : > { %724 = vrot.lane.b32.xlu2 %v2184_v14, %s2028_s28 }
 0x251   : > { %v569_v16 = vpop.permute.xlu1 %568 }
 0x252   : > { %v747_v19 = vunpack.c.l.b16 %v569_v16  ;;  %v600_v20 = vpop.permute.xlu0 %599 }
 0x253   : > { %v605_v21 = vsel %vm575_vm15, %v600_v20, 0 }
 0x254   : > { %v2191_v22 = vpack.c.b16 %v747_v19, %v746_v17  ;;  %614 = vmatpush.bf16.xpose.msra.mxu2 %v605_v21 }
 0x256   : > { %1069 = vrot.lane.b32.xlu1 %v673_v59, %s2029_s29  ;;  %749 = vrot.lane.b32.xlu0 %v2191_v22, %s2028_s28 }
 0x257   : > { %1019 = vrot.lane.b32.xlu2 %v623_v0, %s2029_s29 }
 0x25a   : > { %v574_v24 = vpop.permute.xlu0 %573 }
 0x25b   : > { %1720 = vmatmul.msk.bf16.vlgmr.msra.gmra.mxu2 %vm575_vm15, %v598_v50  ;;  %v580_v25 = vsel %vm575_vm15, %v574_v24, 0 }
 0x25c   : > { %589 = vmatpush.bf16.xpose.msrb.mxu1 %v580_v25 }
 0x25e   : > { %969 = vrot.lane.b32.xlu0 %v572_v53, %s2029_s29 }
 0x25f   : > { %994 = vrot.lane.b32.xlu2 %v598_v50, %s2029_s29 }
 0x263   : > { %1719 = vmatmul.msk.bf16.vlgmr.msrb.gmra.mxu1 %vm575_vm15, %v572_v53 }
 0x298   : > { %v625_v26 = vpop.permute.xlu2 %624 }
 0x299   : > { %v630_v27 = vsel %vm575_vm15, %v625_v26, 0 }
 0x29a   : > { %639 = vmatpush.bf16.xpose.msra.mxu3 %v630_v27 }
 0x2a1   : > { %1721 = vmatmul.msk.bf16.vlgmr.msra.gmra.mxu3 %vm575_vm15, %v623_v0 }
 0x2a8   : > { %v675_v28 = vpop.permute.xlu1 %674 }
 0x2a9   : > { %v725_v29 = vpop.permute.xlu2 %724  ;;  %v680_v30 = vsel %vm575_vm15, %v675_v28, 0 }
 0x2aa   : > { %689 = vmatpush.bf16.xpose.msrb.mxu2 %v680_v30  ;;  %v730_v31 = vsel %vm575_vm15, %v725_v29, 0 }
 0x2ab   : > { %739 = vmatpush.bf16.xpose.msra.mxu0 %v730_v31 }
 0x2b1   : > { %v1020_v32 = vpop.permute.xlu2 %1019  ;;  %1723 = vmatmul.msk.bf16.vlgmr.msrb.gmra.mxu2 %vm575_vm15, %v673_v59 }
 0x2b2   : > { %1725 = vmatmul.msk.bf16.vlgmr.msra.gmra.mxu0 %vm575_vm15, %v2184_v14 }
 0x2b3   : > { %1032 = vmatpush.bf16.msrb.mxu0 %v1020_v32 }
 0x2b8   : > { %v650_v34 = vpop.permute.xlu0 %649 }
 0x2b9   : > { %v655_v35 = vsel %vm575_vm15, %v650_v34, 0  ;;  %v995_v38 = vpop.permute.xlu2 %994 }
 0x2ba   : > { %664 = vmatpush.bf16.xpose.msra.mxu1 %v655_v35 }
 0x2c0   : > { %v700_v36 = vpop.permute.xlu1 %699 }
 0x2c1   : > { %v705_v37 = vsel %vm575_vm15, %v700_v36, 0  ;;  %1722 = vmatmul.msk.bf16.vlgmr.msra.gmra.mxu1 %vm575_vm15, %v2178_v6 }
 0x2c2   : > { %714 = vmatpush.bf16.xpose.msrb.mxu3 %v705_v37 }
 0x2c8   : > { %v750_v39 = vpop.permute.xlu0 %749  ;;  %v1070_v42 = vpop.permute.xlu1 %1069 }
 0x2c9   : > { %v755_v40 = vsel %vm575_vm15, %v750_v39, 0  ;;  %1724 = vmatmul.msk.bf16.vlgmr.msrb.gmra.mxu3 %vm575_vm15, %v2182_v13 }
 0x2ca   : > { %1007 = vmatpush.bf16.msra.mxu3 %v995_v38  ;;  %764 = vmatpush.bf16.xpose.msrb.mxu1 %v755_v40 }
 0x2d0   : > { %v970_v41 = vpop.permute.xlu0 %969 }
 0x2d1   : > { %982 = vmatpush.bf16.msra.mxu2 %v970_v41  ;;  %1726 = vmatmul.msk.bf16.vlgmr.msrb.gmra.mxu1 %vm575_vm15, %v2191_v22 }
 0x2d5   : > { %1082 = vmatpush.bf16.msrb.mxu2 %v1070_v42 }
 0x2de   : > { %v616_v33 = vpop.f32.mrf.mxu2 }
 0x2df   : > { %v778_v48 = vsel %vm771_vm0, %v616_v33, -inf }
 0x2e0   : > { %v591_v23 = vpop.f32.mrf.mxu1 }
 0x2e1   : > { %v772_v43 = vsel %vm771_vm0, %v591_v23, -inf }
 0x2e2   : > { %773 = vmax.xlane.f32.xlu2 %v772_v43 }
 0x2e6   : > { %v618_v44 = vpop.f32.mrf.mxu2 }
 0x2e7   : > { %v781_v45 = vsel %vm771_vm0, %v618_v44, -inf }
 0x2e8   : > { %782 = vmax.xlane.f32.xlu0 %v781_v45  ;;  %v593_v46 = vpop.f32.mrf.mxu1 }
 0x2e9   : > { %v775_v47 = vsel %vm771_vm0, %v593_v46, -inf }
 0x2ea   : > { %776 = vmax.xlane.f32.xlu1 %v775_v47 }
 0x2f2   : > { %779 = vmax.xlane.f32.xlu1 %v778_v48 }
 0x324   : > { %v2222_v49 = vpop.f32.mrf.mxu3 }
 0x325   : > { %v784_v50 = vsel %vm771_vm0, %v2222_v49, -inf }
 0x326   : > { %785 = vmax.xlane.f32.xlu0 %v784_v50 }
 0x32c   : > { %v2238_v57 = vpop.f32.mrf.mxu3 }
 0x32d   : > { %v787_v58 = vsel %vm771_vm0, %v2238_v57, -inf }
 0x32f   : > { %v2226_v51 = vpop.f32.mrf.mxu0 }
 0x330   : > { %v808_v52 = vsel %vm771_vm0, %v2226_v51, -inf }
 0x331   : > { %809 = vmax.xlane.f32.xlu1 %v808_v52 }
 0x334   : > { %v2230_v53 = vpop.f32.mrf.mxu2 }
 0x335   : > { %v796_v54 = vsel %vm771_vm0, %v2230_v53, -inf }
 0x336   : > { %797 = vmax.xlane.f32.xlu2 %v796_v54 }
 0x337   : > { %v2234_v55 = vpop.f32.mrf.mxu0 }
 0x338   : > { %v811_v56 = vsel %vm771_vm0, %v2234_v55, -inf }
 0x339   : > { %812 = vmax.xlane.f32.xlu0 %v811_v56 }
 0x33c   : > { %v2258_v12 = vpop.f32.mrf.mxu2 }
 0x33d   : > { %v799_v20 = vsel %vm771_vm0, %v2258_v12, -inf }
 0x33e   : > { %788 = vmax.xlane.f32.xlu2 %v787_v58  ;;  %v2242_v59 = vpop.f32.mrf.mxu1 }
 0x33f   : > { %v790_v60 = vsel %vm771_vm0, %v2242_v59, -inf }
 0x341   : > { %791 = vmax.xlane.f32.xlu0 %v790_v60 }
 0x346   : > { %v2250_v63 = vpop.f32.mrf.mxu1 }
 0x347   : > { %v793_v1 = vsel %vm771_vm0, %v2250_v63, -inf }
 0x34c   : > { %v2246_v61 = vpop.f32.mrf.mxu3 }
 0x34d   : > { %v802_v62 = vsel %vm771_vm0, %v2246_v61, -inf }
 0x34e   : > { %803 = vmax.xlane.f32.xlu2 %v802_v62  ;;  %v2266_v24 = vpop.f32.mrf.mxu1 }
 0x34f   : > { %v814_v30 = vsel %vm771_vm0, %v2266_v24, -inf }
 0x354   : > { %v2268_v26 = vpop.f32.mrf.mxu3 }
 0x355   : > { %v774_v0 = vpop.xlane.xlu2 %773  ;;  %v805_v28 = vsel %vm771_vm0, %v2268_v26, -inf }
 0x356   : > { %v820_v2 = vsub.f32 %v591_v23, %v774_v0  ;;  %794 = vmax.xlane.f32.xlu2 %v793_v1  ;;  %v2280_v32 = vpop.f32.mrf.mxu1 }
 0x357   : > { %v817_v34 = vsel %vm771_vm0, %v2280_v32, -inf }
 0x358   : > { %v836_v3 = vmul.f32 1.442695, %v820_v2 }
 0x35a   : > { %1899 = vpow2.f32 %v836_v3 }
 0x35b   : > { %v783_v10 = vpop.xlane.xlu0 %782 }
 0x35c   : > { %v823_v17 = vsub.f32 %v618_v44, %v783_v10 }
 0x35d   : > { %v777_v4 = vpop.xlane.xlu1 %776 }
 0x35e   : > { %v821_v5 = vsub.f32 %v593_v46, %v777_v4  ;;  %v842_v25 = vmul.f32 1.442695, %v823_v17 }
 0x360   : > { %v2254_v7 = vpop.eup %1899  ;;  %v838_v8 = vmul.f32 1.442695, %v821_v5 }
 0x361   : > { %v868_v9 = vsel %vm771_vm0, %v2254_v7, 0.0 }
 0x362   : > { %1901 = vpow2.f32 %v838_v8  ;;  %869 = vadd.xlane.f32.xlu1 %v868_v9 }
 0x365   : > { %v780_v11 = vpop.xlane.xlu1 %779 }
 0x366   : > { %v822_v15 = vsub.f32 %v616_v33, %v780_v11 }
 0x368   : > { %v2260_v16 = vpop.eup %1901  ;;  %v840_v19 = vmul.f32 1.442695, %v822_v15 }
 0x369   : > { %v871_v21 = vsel %vm771_vm0, %v2260_v16, 0.0 }
 0x36a   : > { %1903 = vpow2.f32 %v840_v19  ;;  %800 = vmax.xlane.f32.xlu1 %v799_v20  ;;  %872 = vadd.xlane.f32.xlu0 %v871_v21 }
 0x36b   : > { %1905 = vpow2.f32 %v842_v25 }
 0x370   : > { %v2270_v27 = vpop.eup %1903 }
 0x371   : > { %v874_v29 = vsel %vm771_vm0, %v2270_v27, 0.0  ;;  %v2278_v31 = vpop.eup %1905 }
 0x372   : > { %806 = vmax.xlane.f32.xlu1 %v805_v28  ;;  %875 = vadd.xlane.f32.xlu2 %v874_v29  ;;  %v877_v35 = vsel %vm771_vm0, %v2278_v31, 0.0 }
 0x373   : > { %815 = vmax.xlane.f32.xlu0 %v814_v30 }
 0x37a   : > { %818 = vmax.xlane.f32.xlu2 %v817_v34  ;;  %878 = vadd.xlane.f32.xlu1 %v877_v35 }
 0x387   : > { %1044 = vrot.lane.b32.xlu0 %v2178_v6, %s2029_s29 }
 0x399   : > { %v786_v36 = vpop.xlane.xlu0 %785 }
 0x39a   : > { %v824_v37 = vsub.f32 %v2222_v49, %v786_v36 }
 0x39c   : > { %v844_v38 = vmul.f32 1.442695, %v824_v37 }
 0x39e   : > { %1907 = vpow2.f32 %v844_v38 }
 0x3a4   : > { %v810_v39 = vpop.xlane.xlu1 %809  ;;  %v2289_v40 = vpop.eup %1907 }
 0x3a5   : > { %v832_v41 = vsub.f32 %v2226_v51, %v810_v39  ;;  %v880_v42 = vsel %vm771_vm0, %v2289_v40, 0.0 }
 0x3a6   : > { %881 = vadd.xlane.f32.xlu2 %v880_v42 }
 0x3a7   : > { %v860_v33 = vmul.f32 1.442695, %v832_v41 }
 0x3a9   : > { %1909 = vpow2.f32 %v860_v33  ;;  %v798_v23 = vpop.xlane.xlu2 %797 }
 0x3aa   : > { %v828_v43 = vsub.f32 %v2230_v53, %v798_v23 }
 0x3ac   : > { %v852_v6 = vmul.f32 1.442695, %v828_v43  ;;  %v813_v44 = vpop.xlane.xlu0 %812 }
 0x3ad   : > { %v833_v45 = vsub.f32 %v2234_v55, %v813_v44 }
 0x3ae   : > { %1911 = vpow2.f32 %v852_v6 }
 0x3af   : > { %v2296_v46 = vpop.eup %1909  ;;  %v862_v47 = vmul.f32 1.442695, %v833_v45 }
 0x3b0   : > { %v904_v48 = vsel %vm771_vm0, %v2296_v46, 0.0 }
 0x3b1   : > { %1913 = vpow2.f32 %v862_v47  ;;  %905 = vadd.xlane.f32.xlu1 %v904_v48  ;;  %v789_v49 = vpop.xlane.xlu2 %788 }
 0x3b2   : > { %v825_v50 = vsub.f32 %v2238_v57, %v789_v49 }
 0x3b4   : > { %v2301_v51 = vpop.eup %1911  ;;  %v846_v52 = vmul.f32 1.442695, %v825_v50  ;;  %v792_v53 = vpop.xlane.xlu0 %791 }
 0x3b5   : > { %v826_v54 = vsub.f32 %v2242_v59, %v792_v53  ;;  %v892_v55 = vsel %vm771_vm0, %v2301_v51, 0.0 }
 0x3b6   : > { %893 = vadd.xlane.f32.xlu2 %v892_v55  ;;  %1915 = vpow2.f32 %v846_v52 }
 0x3b7   : > { %v2306_v56 = vpop.eup %1913  ;;  %v848_v58 = vmul.f32 1.442695, %v826_v54 }
 0x3b8   : > { %v907_v60 = vsel %vm771_vm0, %v2306_v56, 0.0 }
 0x3b9   : > { %1917 = vpow2.f32 %v848_v58  ;;  %908 = vadd.xlane.f32.xlu1 %v907_v60 }
 0x3bc   : > { %v2310_v57 = vpop.eup %1915 }
 0x3bd   : > { %v883_v59 = vsel %vm771_vm0, %v2310_v57, 0.0 }
 0x3bf   : > { %v2312_v62 = vpop.eup %1917 }
 0x3c0   : > { %v886_v0 = vsel %vm771_vm0, %v2312_v62, 0.0 }
 0x3c1   : > { %884 = vadd.xlane.f32.xlu1 %v883_v59  ;;  %887 = vadd.xlane.f32.xlu0 %v886_v0  ;;  %v804_v1 = vpop.xlane.xlu2 %803 }
 0x3c2   : > { %v830_v2 = vsub.f32 %v2246_v61, %v804_v1 }
 0x3c4   : > { %v856_v3 = vmul.f32 1.442695, %v830_v2 }
 0x3c6   : > { %1919 = vpow2.f32 %v856_v3 }
 0x3c9   : > { %v795_v9 = vpop.xlane.xlu2 %794 }
 0x3ca   : > { %v827_v19 = vsub.f32 %v2250_v63, %v795_v9 }
 0x3cc   : > { %v2319_v4 = vpop.eup %1919  ;;  %v850_v21 = vmul.f32 1.442695, %v827_v19 }
 0x3cd   : > { %v898_v5 = vsel %vm771_vm0, %v2319_v4, 0.0 }
 0x3ce   : > { %899 = vadd.xlane.f32.xlu2 %v898_v5 }
 0x3d5   : > { %v870_v8 = vpop.xlane.xlu1 %869 }
 0x3d6   : > { %1921 = vrcp.f32 %v870_v8 }
 0x3dc   : > { %v1922_v15 = vpop.eup %1921 }
 0x3dd   : > { %v801_v10 = vpop.xlane.xlu1 %800  ;;  %v873_v11 = vpop.xlane.xlu0 %872  ;;  %v932_v20 = vmul.f32 %v1922_v15, %v2254_v7 }
 0x3de   : > { %v829_v17 = vsub.f32 %v2258_v12, %v801_v10  ;;  %1923 = vrcp.f32 %v873_v11 }
 0x3df   : > { %v948_v28 = vpack.c.bf16 %v932_v20, %v932_v20 }
 0x3e0   : > { %v854_v61 = vmul.f32 1.442695, %v829_v17 }
 0x3e1   : > { %v966_v7 = vunpack.c.l.b16 %v948_v28 }
 0x3e2   : > { %1925 = vpow2.f32 %v854_v61 }
 0x3e3   : > { %1927 = vpow2.f32 %v850_v21 }
 0x3e4   : > { %v1924_v25 = vpop.eup %1923 }
 0x3e5   : > { %v933_v29 = vmul.f32 %v1924_v25, %v2260_v16  ;;  %v807_v30 = vpop.xlane.xlu1 %806  ;;  %v876_v34 = vpop.xlane.xlu2 %875 }
 0x3e6   : > { %v831_v35 = vsub.f32 %v2268_v26, %v807_v30  ;;  %1094 = vrot.lane.b32.xlu2 %v2182_v13, %s2029_s29  ;;  %1929 = vrcp.f32 %v876_v34  ;;  %v816_v6 = vpop.xlane.xlu0 %815 }
 0x3e7   : > { %v949_v12 = vpack.c.bf16 %v933_v29, %v933_v29  ;;  %v834_v55 = vsub.f32 %v2266_v24, %v816_v6 }
 0x3e8   : > { %v2330_v36 = vpop.eup %1925  ;;  %v858_v63 = vmul.f32 1.442695, %v831_v35 }
 0x3e9   : > { %v967_v37 = vunpack.c.l.b16 %v949_v12  ;;  %v895_v38 = vsel %vm771_vm0, %v2330_v36, 0.0  ;;  %v2334_v39 = vpop.eup %1927  ;;  %v864_v58 = vmul.f32 1.442695, %v834_v55 }
 0x3ea   : > { %1931 = vpow2.f32 %v858_v63  ;;  %896 = vadd.xlane.f32.xlu1 %v895_v38  ;;  %v889_v44 = vsel %vm771_vm0, %v2334_v39, 0.0 }
 0x3eb   : > { %v968_v16 = vpack.c.b16 %v967_v37, %v966_v7 }
 0x3ec   : > { %v1930_v13 = vpop.eup %1929 }
 0x3ed   : > { %v819_v26 = vpop.xlane.xlu2 %818  ;;  %v879_v41 = vpop.xlane.xlu1 %878  ;;  %1727 = vmatmul.msk.bf16.vlgmr.msra.gmra.mxu2 %vm771_vm0, %v968_v16  ;;  %v934_v43 = vmul.f32 %v1930_v13, %v2270_v27 }
 0x3ee   : > { %v835_v42 = vsub.f32 %v2280_v32, %v819_v26  ;;  %1933 = vrcp.f32 %v879_v41  ;;  %1144 = vrot.lane.b32.xlu2 %v2191_v22, %s2029_s29 }
 0x3ef   : > { %v950_v47 = vpack.c.bf16 %v934_v43, %v934_v43 }
 0x3f0   : > { %v2340_v33 = vpop.eup %1931  ;;  %v866_v23 = vmul.f32 1.442695, %v835_v42 }
 0x3f1   : > { %v901_v45 = vsel %vm771_vm0, %v2340_v33, 0.0  ;;  %v991_v50 = vunpack.c.l.b16 %v950_v47 }
 0x3f2   : > { %1935 = vpow2.f32 %v866_v23  ;;  %890 = vadd.xlane.f32.xlu1 %v889_v44  ;;  %902 = vadd.xlane.f32.xlu0 %v901_v45 }
 0x3f4   : > { %v1934_v32 = vpop.eup %1933 }
 0x3f5   : > { %v935_v48 = vmul.f32 %v1934_v32, %v2278_v31 }
 0x3f7   : > { %v951_v22 = vpack.c.bf16 %v935_v48, %v935_v48 }
 0x3f8   : > { %v2348_v49 = vpop.eup %1935 }
 0x3f9   : > { %v992_v52 = vunpack.c.l.b16 %v951_v22  ;;  %v1045_v27 = vpop.permute.xlu0 %1044  ;;  %v913_v53 = vsel %vm771_vm0, %v2348_v49, 0.0 }
 0x3fa   : > { %1057 = vmatpush.bf16.msra.mxu1 %v1045_v27  ;;  %914 = vadd.xlane.f32.xlu0 %v913_v53 }
 0x3fb   : > { %v993_v54 = vpack.c.b16 %v992_v52, %v991_v50 }
 0x3fd   : > { %1728 = vmatmul.msk.bf16.vlgmr.msra.gmra.mxu3 %vm771_vm0, %v993_v54 }
 0x40b   : > { %1119 = vrot.lane.b32.xlu1 %v2184_v14, %s2029_s29 }
 0x419   : > { %v882_v60 = vpop.xlane.xlu2 %881 }
 0x424   : > { %v906_v31 = vpop.xlane.xlu1 %905 }
 0x425   : > { %1937 = vrcp.f32 %v906_v31 }
 0x426   : > { %1939 = vpow2.f32 %v864_v58 }
 0x429   : > { %v894_v19 = vpop.xlane.xlu2 %893 }
 0x42b   : > { %v1938_v0 = vpop.eup %1937 }
 0x42c   : > { %v909_v59 = vpop.xlane.xlu1 %908  ;;  %v944_v1 = vmul.f32 %v1938_v0, %v2296_v46  ;;  %v2357_v2 = vpop.eup %1939 }
 0x42d   : > { %1941 = vrcp.f32 %v909_v59  ;;  %v910_v24 = vsel %vm771_vm0, %v2357_v2, 0.0 }
 0x42e   : > { %1943 = vrcp.f32 %v882_v60  ;;  %v960_v5 = vpack.c.bf16 %v944_v1, %v944_v1 }
 0x430   : > { %v1116_v15 = vunpack.c.l.b16 %v960_v5 }
 0x433   : > { %v1942_v3 = vpop.eup %1941 }
 0x434   : > { %v945_v8 = vmul.f32 %v1942_v3, %v2306_v56  ;;  %v885_v14 = vpop.xlane.xlu1 %884  ;;  %v1944_v9 = vpop.eup %1943 }
 0x435   : > { %1945 = vrcp.f32 %v885_v14  ;;  %911 = vadd.xlane.f32.xlu1 %v910_v24  ;;  %v936_v11 = vmul.f32 %v1944_v9, %v2289_v40  ;;  %v888_v40 = vpop.xlane.xlu0 %887 }
 0x436   : > { %v961_v10 = vpack.c.bf16 %v945_v8, %v945_v8  ;;  %1947 = vrcp.f32 %v894_v19 }
 0x437   : > { %v952_v20 = vpack.c.bf16 %v936_v11, %v936_v11 }
 0x438   : > { %v1117_v17 = vunpack.c.l.b16 %v961_v10 }
 0x439   : > { %v1016_v56 = vunpack.c.l.b16 %v952_v20 }
 0x43a   : > { %v1118_v46 = vpack.c.b16 %v1117_v17, %v1116_v15 }
 0x43b   : > { %v1946_v61 = vpop.eup %1945 }
 0x43c   : > { %v937_v21 = vmul.f32 %v1946_v61, %v2310_v57  ;;  %v1948_v63 = vpop.eup %1947 }
 0x43d   : > { %v940_v7 = vmul.f32 %v1948_v63, %v2301_v51  ;;  %v1799_v63 = vld [vmem:[%s2113_s17 + $0x8] sm:$0xff] }
 0x43e   : > { %v953_v25 = vpack.c.bf16 %v937_v21, %v937_v21  ;;  %1256 = vmatpush.bf16.msra.mxu2 %v1799_v63 }
 0x43f   : > { %v956_v37 = vpack.c.bf16 %v940_v7, %v940_v7  ;;  %v1798_v7 = vld [vmem:[%s2113_s17] sm:$0xff] }
 0x440   : > { %v1017_v28 = vunpack.c.l.b16 %v953_v25 }
 0x441   : > { %v900_v29 = vpop.xlane.xlu2 %899  ;;  %v1066_v23 = vunpack.c.l.b16 %v956_v37 }
 0x442   : > { %v1018_v30 = vpack.c.b16 %v1017_v28, %v1016_v56  ;;  %1257 = vmatpush.bf16.msra.mxu2 %v1798_v7 }
 0x444   : > { %1729 = vmatmul.msk.bf16.vlgmr.msrb.gmra.mxu0 %vm771_vm0, %v1018_v30 }
 0x449   : > { %v1095_v34 = vpop.permute.xlu2 %1094 }
 0x44a   : > { %1107 = vmatpush.bf16.msrb.mxu3 %v1095_v34 }
 0x451   : > { %v1145_v35 = vpop.permute.xlu2 %1144 }
 0x452   : > { %1157 = vmatpush.bf16.msrb.mxu1 %v1145_v35 }
 0x45d   : > { %v897_v12 = vpop.xlane.xlu1 %896 }
 0x45e   : > { %1949 = vrcp.f32 %v897_v12 }
 0x45f   : > { %1951 = vrcp.f32 %v888_v40 }
 0x460   : > { %1953 = vrcp.f32 %v900_v29 }
 0x464   : > { %v1950_v57 = vpop.eup %1949 }
 0x465   : > { %v941_v38 = vmul.f32 %v1950_v57, %v2330_v36  ;;  %v891_v16 = vpop.xlane.xlu1 %890  ;;  %v903_v26 = vpop.xlane.xlu0 %902 }
 0x466   : > { %v1952_v41 = vpop.eup %1951  ;;  %1955 = vrcp.f32 %v891_v16 }
 0x467   : > { %v1954_v13 = vpop.eup %1953  ;;  %v957_v42 = vpack.c.bf16 %v941_v38, %v941_v38  ;;  %1957 = vrcp.f32 %v903_v26  ;;  %v938_v43 = vmul.f32 %v1952_v41, %v2312_v62 }
 0x468   : > { %v942_v44 = vmul.f32 %v1954_v13, %v2319_v4 }
 0x469   : > { %v1067_v6 = vunpack.c.l.b16 %v957_v42  ;;  %v954_v47 = vpack.c.bf16 %v938_v43, %v938_v43 }
 0x46a   : > { %v958_v36 = vpack.c.bf16 %v942_v44, %v942_v44 }
 0x46b   : > { %v1068_v45 = vpack.c.b16 %v1067_v6, %v1066_v23  ;;  %v1041_v27 = vunpack.c.l.b16 %v954_v47 }
 0x46c   : > { %v1956_v51 = vpop.eup %1955  ;;  %v1091_v54 = vunpack.c.l.b16 %v958_v36 }
 0x46d   : > { %v1958_v32 = vpop.eup %1957  ;;  %v939_v48 = vmul.f32 %v1956_v51, %v2334_v39  ;;  %1731 = vmatmul.msk.bf16.vlgmr.msrb.gmra.mxu2 %vm771_vm0, %v1068_v45  ;;  %v915_v39 = vpop.xlane.xlu0 %914 }
 0x46e   : > { %v943_v22 = vmul.f32 %v1958_v32, %v2340_v33  ;;  %1959 = vrcp.f32 %v915_v39 }
 0x46f   : > { %v955_v50 = vpack.c.bf16 %v939_v48, %v939_v48 }
 0x470   : > { %v959_v52 = vpack.c.bf16 %v943_v22, %v943_v22  ;;  %v984_v11 = vpop.f32.mrf.mxu2 }
 0x471   : > { %v1042_v53 = vunpack.c.l.b16 %v955_v50 }
 0x472   : > { %v1092_v62 = vunpack.c.l.b16 %v959_v52 }
 0x473   : > { %v1043_v55 = vpack.c.b16 %v1042_v53, %v1041_v27 }
 0x474   : > { %v1093_v31 = vpack.c.b16 %v1092_v62, %v1091_v54  ;;  %v1960_v33 = vpop.eup %1959 }
 0x475   : > { %1730 = vmatmul.msk.bf16.vlgmr.msra.gmra.mxu1 %vm771_vm0, %v1043_v55  ;;  %v947_v60 = vmul.f32 %v1960_v33, %v2348_v49 }
 0x476   : > { %1732 = vmatmul.msk.bf16.vlgmr.msrb.gmra.mxu3 %vm771_vm0, %v1093_v31 }
 0x477   : > { %v963_v0 = vpack.c.bf16 %v947_v60, %v947_v60 }
 0x478   : > { %v986_v15 = vpop.f32.mrf.mxu2 }
 0x479   : > { %v1142_v5 = vunpack.c.l.b16 %v963_v0 }
 0x47d   : > { %v1120_v4 = vpop.permute.xlu1 %1119 }
 0x47e   : > { %1132 = vmatpush.bf16.msra.mxu0 %v1120_v4 }
 0x480   : > { %v1009_v17 = vpop.f32.mrf.mxu3 }
 0x481   : > { %1733 = vmatmul.msk.bf16.vlgmr.msra.gmra.mxu0 %vm771_vm0, %v1118_v46 }
 0x488   : > { %v1011_v49 = vpop.f32.mrf.mxu3 }
 0x4a8   : > { %v912_v58 = vpop.xlane.xlu1 %911 }
 0x4a9   : > { %1961 = vrcp.f32 %v912_v58 }
 0x4af   : > { %v1962_v59 = vpop.eup %1961 }
 0x4b0   : > { %v946_v1 = vmul.f32 %v1962_v59, %v2357_v2  ;;  %v2395_v59 = vld [vmem:[%s2128_s8] sm:$0xff] }
 0x4b1   : > { %v1231_v0 = vperm.slane %v2395_v59, 5 }
 0x4b2   : > { %v962_v3 = vpack.c.bf16 %v946_v1, %v946_v1 }
 0x4b4   : > { %v1141_v8 = vunpack.c.l.b16 %v962_v3 }
 0x4b6   : > { %v1143_v14 = vpack.c.b16 %v1142_v5, %v1141_v8  ;;  %v1980_v5 = vld [vmem:[#allocation2] sm:$0xff] }
 0x4b8   : > { %1734 = vmatmul.msk.bf16.vlgmr.msrb.gmra.mxu1 %vm771_vm0, %v1143_v14 }
 0x4c1   : > { %v1034_v24 = vpop.f32.mrf.mxu0 }
 0x4c9   : > { %v1036_v9 = vpop.f32.mrf.mxu0 }
 0x4ca   : > { %v1859_v10 = vpack.i.bf16 %v1036_v9, %v1034_v24 }
 0x4cc   : > { %1860 = vrot.lane.b32.xlu1 %v1859_v10, %s2030_s30  ;;  %v1981_v10 = vld [vmem:[#allocation2 + $0x8] sm:$0xff] }
 0x4f0   : > { %v1084_v19 = vpop.f32.mrf.mxu2 }
 0x4f2   : > { %v1059_v46 = vpop.f32.mrf.mxu1 }
 0x4f8   : > { %v1086_v61 = vpop.f32.mrf.mxu2 }
 0x4f9   : > { %v1864_v20 = vpack.i.bf16 %v1086_v61, %v1084_v19  ;;  %v1109_v2 = vpop.f32.mrf.mxu3 }
 0x4fa   : > { %v1061_v21 = vpop.f32.mrf.mxu1 }
 0x4fb   : > { %1865 = vrot.lane.b32.xlu2 %v1864_v20, %s2031_s7  ;;  %v1874_v56 = vpack.i.bf16 %v1061_v21, %v1059_v46  ;;  %v1983_v21 = vld [vmem:[#allocation2 + $0x18] sm:$0xff] }
 0x4fe   : > { %v1134_v25 = vpop.f32.mrf.mxu0 }
 0x501   : > { %v1111_v28 = vpop.f32.mrf.mxu3 }
 0x502   : > { %v1879_v34 = vpack.i.bf16 %v1111_v28, %v1109_v2 }
 0x503   : > { %1875 = vrot.lane.b32.xlu2 %v1874_v56, %s2030_s30 }
 0x506   : > { %v1136_v29 = vpop.f32.mrf.mxu0 }
 0x507   : > { %v1869_v30 = vpack.i.bf16 %v1136_v29, %v1134_v25 }
 0x509   : > { %1870 = vrot.lane.b32.xlu0 %v1869_v30, %s2032_s11 }
 0x50b   : > { %1880 = vrot.lane.b32.xlu2 %v1879_v34, %s2031_s7 }
 0x535   : > { %v1159_v35 = vpop.f32.mrf.mxu1 }
 0x53d   : > { %v1161_v40 = vpop.f32.mrf.mxu1 }
 0x53e   : > { %v1884_v12 = vpack.i.bf16 %v1161_v40, %v1159_v35  ;;  %v1861_v57 = vpop.permute.xlu1 %1860 }
 0x53f   : > { %v1863_v38 = vunpack.i.h.bf16 %v1861_v57  ;;  %v1862_v16 = vunpack.i.l.bf16 %v1861_v57 }
 0x540   : > { %1885 = vrot.lane.b32.xlu1 %v1884_v12, %s2032_s11 }
 0x541   : > { %v1213_v42 = vsel %vm575_vm15, %v986_v15, %v1863_v38  ;;  %v1212_v23 = vsel %vm575_vm15, %v984_v11, %v1862_v16 }
 0x555   : > { %v1866_v37 = vpop.permute.xlu2 %1865 }
 0x556   : > { %v1868_v26 = vunpack.i.h.bf16 %v1866_v37  ;;  %v1867_v41 = vunpack.i.l.bf16 %v1866_v37 }
 0x558   : > { %v1216_v44 = vsel %vm771_vm0, %v1212_v23, %v1867_v41  ;;  %v1217_v45 = vsel %vm771_vm0, %v1213_v42, %v1868_v26 }
 0x55d   : > { %v1876_v48 = vpop.permute.xlu2 %1875 }
 0x55e   : > { %v1878_v22 = vunpack.i.h.bf16 %v1876_v48  ;;  %v1877_v50 = vunpack.i.l.bf16 %v1876_v48 }
 0x560   : > { %v1215_v54 = vsel %vm575_vm15, %v1011_v49, %v1878_v22  ;;  %v1214_v62 = vsel %vm575_vm15, %v1009_v17, %v1877_v50  ;;  %v1982_v49 = vld [vmem:[#allocation2 + $0x10] sm:$0xff] }
 0x565   : > { %v1881_v36 = vpop.permute.xlu2 %1880 }
 0x566   : > { %v1883_v52 = vunpack.i.h.bf16 %v1881_v36  ;;  %v1882_v27 = vunpack.i.l.bf16 %v1881_v36 }
 0x568   : > { %v1219_v4 = vsel %vm771_vm0, %v1215_v54, %v1883_v52  ;;  %v1218_v39 = vsel %vm771_vm0, %v1214_v62, %v1882_v27 }
 0x57b   : > { %v1871_v13 = vpop.permute.xlu0 %1870 }
 0x57c   : > { %v1873_v43 = vunpack.i.h.bf16 %v1871_v13  ;;  %v1872_v6 = vunpack.i.l.bf16 %v1871_v13 }
 0x57e   : > { %v1222_v51 = vsel %vm1220_vm2, %v1217_v45, %v1873_v43  ;;  %v1221_v32 = vsel %vm1220_vm2, %v1216_v44, %v1872_v6  ;;  %v1801_v44 = vld [vmem:[%s2118_s20 + $0x8] sm:$0xff] }
 0x57f   : > { %v1225_v47 = vpack.c.bf16 %v1222_v51, %v1221_v32  ;;  %1402 = vmatpush.bf16.msra.mxu3 %v1801_v44 }
 0x581   : > { %1743 = vmatmul.msk.bf16.vlgmr.msra.gmra.mxu2 %vm388_vm1, %v1225_v47  ;;  %v1800_v47 = vld [vmem:[%s2118_s20] sm:$0xff] }
 0x583   : > { %1403 = vmatpush.bf16.msra.mxu3 %v1800_v47  ;;  %v1805_v47 = vld [vmem:[%s2123_s9 + $0x18] sm:$0xff] }
 0x5b2   : > { %v1886_v53 = vpop.permute.xlu1 %1885 }
 0x5b3   : > { %v1888_v55 = vunpack.i.h.bf16 %v1886_v53  ;;  %v1887_v31 = vunpack.i.l.bf16 %v1886_v53 }
 0x5b5   : > { %v1223_v58 = vsel %vm1220_vm2, %v1218_v39, %v1887_v31  ;;  %v1224_v33 = vsel %vm1220_vm2, %v1219_v4, %v1888_v55 }
 0x5b6   : > { %v1226_v60 = vpack.c.bf16 %v1224_v33, %v1223_v58 }
 0x5b8   : > { %1744 = vmatmul.msk.bf16.gmra.mxu2 %vm388_vm1, %v1226_v60  ;;  %v1361_v60 = vperm.slane %v2395_v59, 2 }
 0x604   : > { %v1259_v1 = vpop.f32.mrf.mxu2 }
 0x605   : > { %v1260_v3 = vadd.f32 %v1259_v1, %v1231_v0 }
 0x607   : > { %v2398_v8 = vadd.f32 %v1980_v5, %v1260_v3  ;;  %v1366_v5 = vperm.slane %v2395_v59, 3 }
 0x609   : > { %v1273_v14 = vsel %vm388_vm1, %v2398_v8, 0.0 }
 0x60a   : > { %1274 = vadd.xlane.f32.xlu2 %v1273_v14 }
 0x60c   : > { %v1261_v24 = vpop.f32.mrf.mxu2 }
 0x60d   : > { %v1262_v9 = vadd.f32 %v1261_v24, %v1231_v0 }
 0x60f   : > { %v2402_v11 = vadd.f32 %v1981_v10, %v1262_v9 }
 0x611   : > { %v1276_v15 = vsel %vm388_vm1, %v2402_v11, 0.0 }
 0x612   : > { %1277 = vadd.xlane.f32.xlu0 %v1276_v15 }
 0x63b   : > { %v1264_v17 = vpop.f32.mrf.mxu2 }
 0x63c   : > { %v1265_v19 = vadd.f32 %v1264_v17, %v1231_v0 }
 0x63e   : > { %v2406_v46 = vadd.f32 %v1982_v49, %v1265_v19 }
 0x640   : > { %v1279_v61 = vsel %vm388_vm1, %v2406_v46, 0.0 }
 0x641   : > { %1280 = vadd.xlane.f32.xlu1 %v1279_v61 }
 0x643   : > { %v1266_v20 = vpop.f32.mrf.mxu2 }
 0x644   : > { %v1267_v2 = vadd.f32 %v1266_v20, %v1231_v0 }
 0x646   : > { %v2410_v25 = vadd.f32 %v1983_v21, %v1267_v2 }
 0x648   : > { %v1282_v56 = vsel %vm388_vm1, %v2410_v25, 0.0 }
 0x649   : > { %1283 = vadd.xlane.f32.xlu2 %v1282_v56 }
 0x67d   : > { %v1275_v28 = vpop.xlane.xlu2 %1274 }
 0x67e   : > { %v1285_v29 = vmul.f32 %v1275_v28, %v2140_v18 }
 0x680   : > { %v1289_v30 = vsub.f32 %v2398_v8, %v1285_v29 }
 0x682   : > { %v1293_v34 = vmul.f32 %v1289_v30, %v1289_v30 }
 0x684   : > { %v1297_v35 = vsel %vm388_vm1, %v1293_v34, 0.0 }
 0x685   : > { %v1278_v40 = vpop.xlane.xlu0 %1277  ;;  %1298 = vadd.xlane.f32.xlu0 %v1297_v35 }
 0x686   : > { %v1286_v12 = vmul.f32 %v1278_v40, %v2140_v18 }
 0x688   : > { %v1290_v63 = vsub.f32 %v2402_v11, %v1286_v12 }
 0x68a   : > { %v1294_v7 = vmul.f32 %v1290_v63, %v1290_v63 }
 0x68c   : > { %v1300_v57 = vsel %vm388_vm1, %v1294_v7, 0.0 }
 0x68d   : > { %1301 = vadd.xlane.f32.xlu1 %v1300_v57 }
 0x6b4   : > { %v1281_v37 = vpop.xlane.xlu1 %1280 }
 0x6b5   : > { %v1287_v38 = vmul.f32 %v1281_v37, %v2140_v18 }
 0x6b7   : > { %v2422_v16 = vsub.f32 %v2406_v46, %v1287_v38 }
 0x6b9   : > { %v1295_v26 = vmul.f32 %v2422_v16, %v2422_v16 }
 0x6bb   : > { %v1303_v41 = vsel %vm388_vm1, %v1295_v26, 0.0 }
 0x6bc   : > { %1304 = vadd.xlane.f32.xlu2 %v1303_v41  ;;  %v1284_v13 = vpop.xlane.xlu2 %1283 }
 0x6bd   : > { %v1288_v42 = vmul.f32 %v1284_v13, %v2140_v18 }
 0x6bf   : > { %v2429_v23 = vsub.f32 %v2410_v25, %v1288_v42 }
 0x6c1   : > { %v1296_v43 = vmul.f32 %v2429_v23, %v2429_v23 }
 0x6c3   : > { %v1306_v6 = vsel %vm388_vm1, %v1296_v43, 0.0 }
 0x6c4   : > { %1307 = vadd.xlane.f32.xlu0 %v1306_v6 }
 0x6f8   : > { %v1299_v45 = vpop.xlane.xlu0 %1298 }
 0x6f9   : > { %v1309_v51 = vmul.f32 %v1299_v45, %v2140_v18  ;;  %v1809_v45 = vld [vmem:[%s2123_s9 + $0x38] sm:$0xff] }
 0x6fa   : > { %1518 = vmatpush.bf16.msrb.mxu0 %v1809_v45 }
 0x6fb   : > { %v1313_v32 = vadd.f32 1e-05, %v1309_v51  ;;  %v1807_v51 = vld [vmem:[%s2123_s9 + $0x28] sm:$0xff] }
 0x6fd   : > { %1963 = vrsqrt.f32 %v1313_v32  ;;  %vm1323_vm4 = vweird.f32 %v1313_v32 }
 0x700   : > { %v1302_v48 = vpop.xlane.xlu1 %1301 }
 0x701   : > { %v1310_v36 = vmul.f32 %v1302_v48, %v2140_v18  ;;  %v1803_v48 = vld [vmem:[%s2123_s9 + $0x8] sm:$0xff] }
 0x703   : > { %v1964_v22 = vpop.eup %1963  ;;  %v1314_v50 = vadd.f32 1e-05, %v1310_v36  ;;  %v1377_v36 = vperm.slane %v2395_v59, 6 }
 0x704   : > { %v1318_v52 = vmul.f32 %v1964_v22, %v1313_v32  ;;  %vm1324_vm3 = vweird.f32 %v1964_v22  ;;  %v1806_v32 = vld [vmem:[%s2123_s9 + $0x20] sm:$0xff] }
 0x705   : > { %1965 = vrsqrt.f32 %v1314_v50  ;;  %vm1325_vm5 = vmor %vm1323_vm4, %vm1324_vm3  ;;  %vm1333_vm7 = vweird.f32 %v1314_v50 }
 0x706   : > { %v1319_v27 = vmul.f32 %v1964_v22, %v1318_v52 }
 0x708   : > { %v1320_v53 = vmul.f32 0.5, %v1319_v27 }
 0x70a   : > { %v1321_v54 = vsub.f32 1.5, %v1320_v53 }
 0x70b   : > { %v1966_v62 = vpop.eup %1965 }
 0x70c   : > { %v1322_v55 = vmul.f32 %v1964_v22, %v1321_v54  ;;  %v1328_v31 = vmul.f32 %v1966_v62, %v1314_v50  ;;  %vm1334_vm6 = vweird.f32 %v1966_v62  ;;  %v1802_v50 = vld [vmem:[%s2123_s9] sm:$0xff] }
 0x70d   : > { %vm1335_vm8 = vmor %vm1333_vm7, %vm1334_vm6 }
 0x70e   : > { %v1329_v4 = vmul.f32 %v1966_v62, %v1328_v31  ;;  %v1326_v39 = vsel %vm1325_vm5, %v1964_v22, %v1322_v55 }
 0x70f   : > { %v1357_v0 = vmul.f32 %v1326_v39, %v1289_v30 }
 0x710   : > { %v1330_v58 = vmul.f32 0.5, %v1329_v4 }
 0x711   : > { %v1362_v14 = vmul.f32 %v1361_v60, %v1357_v0 }
 0x712   : > { %v1331_v33 = vsub.f32 1.5, %v1330_v58 }
 0x713   : > { %v1367_v10 = vadd.f32 %v1366_v5, %v1362_v14 }
 0x714   : > { %v1332_v1 = vmul.f32 %v1966_v62, %v1331_v33 }
 0x716   : > { %v1336_v3 = vsel %vm1335_vm8, %v1966_v62, %v1332_v1 }
 0x717   : > { %v1358_v24 = vmul.f32 %v1336_v3, %v1290_v63 }
 0x719   : > { %v1363_v9 = vmul.f32 %v1361_v60, %v1358_v24 }
 0x71b   : > { %v1368_v15 = vadd.f32 %v1366_v5, %v1363_v9 }
 0x71d   : > { %v1371_v17 = vpack.c.bf16 %v1368_v15, %v1367_v10 }
 0x71f   : > { %1753 = vmatmul.msk.bf16.vlgmr.msra.gmra.mxu3 %vm388_vm1, %v1371_v17 }
 0x72f   : > { %v1305_v19 = vpop.xlane.xlu2 %1304 }
 0x730   : > { %v1311_v49 = vmul.f32 %v1305_v19, %v2140_v18 }
 0x732   : > { %v1315_v61 = vadd.f32 1e-05, %v1311_v49 }
 0x734   : > { %1967 = vrsqrt.f32 %v1315_v61  ;;  %vm1343_vm10 = vweird.f32 %v1315_v61 }
 0x737   : > { %v1308_v20 = vpop.xlane.xlu0 %1307 }
 0x738   : > { %v1312_v2 = vmul.f32 %v1308_v20, %v2140_v18 }
 0x73a   : > { %v1968_v21 = vpop.eup %1967  ;;  %v1316_v56 = vadd.f32 1e-05, %v1312_v2 }
 0x73b   : > { %v1338_v28 = vmul.f32 %v1968_v21, %v1315_v61  ;;  %vm1344_vm9 = vweird.f32 %v1968_v21 }
 0x73c   : > { %1969 = vrsqrt.f32 %v1316_v56  ;;  %vm1345_vm11 = vmor %vm1343_vm10, %vm1344_vm9  ;;  %vm1353_vm13 = vweird.f32 %v1316_v56 }
 0x73d   : > { %v1339_v29 = vmul.f32 %v1968_v21, %v1338_v28 }
 0x73f   : > { %v1340_v30 = vmul.f32 0.5, %v1339_v29 }
 0x741   : > { %v1341_v34 = vsub.f32 1.5, %v1340_v30 }
 0x742   : > { %v1970_v35 = vpop.eup %1969 }
 0x743   : > { %v1342_v40 = vmul.f32 %v1968_v21, %v1341_v34  ;;  %v1348_v12 = vmul.f32 %v1970_v35, %v1316_v56  ;;  %vm1354_vm12 = vweird.f32 %v1970_v35 }
 0x744   : > { %vm1355_vm14 = vmor %vm1353_vm13, %vm1354_vm12 }
 0x745   : > { %v1349_v63 = vmul.f32 %v1970_v35, %v1348_v12  ;;  %v1346_v7 = vsel %vm1345_vm11, %v1968_v21, %v1342_v40 }
 0x746   : > { %v1359_v18 = vmul.f32 %v1346_v7, %v2422_v16  ;;  %v1808_v16 = vld [vmem:[%s2123_s9 + $0x30] sm:$0xff] }
 0x747   : > { %v1350_v57 = vmul.f32 0.5, %v1349_v63  ;;  %1519 = vmatpush.bf16.msrb.mxu0 %v1808_v16 }
 0x748   : > { %v1364_v13 = vmul.f32 %v1361_v60, %v1359_v18 }
 0x749   : > { %v1351_v37 = vsub.f32 1.5, %v1350_v57 }
 0x74a   : > { %v1369_v43 = vadd.f32 %v1366_v5, %v1364_v13 }
 0x74b   : > { %v1352_v38 = vmul.f32 %v1970_v35, %v1351_v37  ;;  %1520 = vmatpush.bf16.msrb.mxu0 %v1807_v51 }
 0x74d   : > { %v1356_v26 = vsel %vm1355_vm14, %v1970_v35, %v1352_v38 }
 0x74e   : > { %v1360_v41 = vmul.f32 %v1356_v26, %v2429_v23  ;;  %v1804_v23 = vld [vmem:[%s2123_s9 + $0x10] sm:$0xff] }
 0x74f   : > { %1521 = vmatpush.bf16.msrb.mxu0 %v1806_v32 }
 0x750   : > { %v1365_v42 = vmul.f32 %v1361_v60, %v1360_v41 }
 0x752   : > { %v1370_v6 = vadd.f32 %v1366_v5, %v1365_v42  ;;  %v1469_v42 = vperm.slane %v2395_v59, 7 }
 0x753   : > { %1522 = vmatpush.bf16.msrb.mxu0 %v1805_v47 }
 0x754   : > { %v1372_v44 = vpack.c.bf16 %v1370_v6, %v1369_v43 }
 0x756   : > { %1754 = vmatmul.msk.bf16.gmra.mxu3 %vm388_vm1, %v1372_v44 }
 0x757   : > { %1523 = vmatpush.bf16.msrb.mxu0 %v1804_v23 }
 0x75b   : > { %1524 = vmatpush.bf16.msrb.mxu0 %v1803_v48 }
 0x75f   : > { %1525 = vmatpush.bf16.msrb.mxu0 %v1802_v50 }
 0x7a2   : > { %v1405_v22 = vpop.f32.mrf.mxu3 }
 0x7a3   : > { %v1406_v52 = vadd.f32 %v1405_v22, %v1377_v36 }
 0x7a5   : > { %v1415_v27 = vmul.f32 %v1406_v52, %v1406_v52 }
 0x7a7   : > { %v1419_v53 = vmul.f32 %v1415_v27, %v1406_v52 }
 0x7a9   : > { %v1423_v54 = vmul.f32 0.044715, %v1419_v53 }
 0x7aa   : > { %v1407_v62 = vpop.f32.mrf.mxu3 }
 0x7ab   : > { %v1427_v55 = vadd.f32 %v1423_v54, %v1406_v52  ;;  %v1408_v31 = vadd.f32 %v1407_v62, %v1377_v36 }
 0x7ad   : > { %v1431_v4 = vmul.f32 0.7978846, %v1427_v55  ;;  %v1416_v39 = vmul.f32 %v1408_v31, %v1408_v31 }
 0x7af   : > { %v1420_v58 = vmul.f32 %v1416_v39, %v1408_v31  ;;  %1971 = vtanh.f32 %v1431_v4 }
 0x7b1   : > { %v1424_v33 = vmul.f32 0.044715, %v1420_v58 }
 0x7b3   : > { %v1428_v60 = vadd.f32 %v1424_v33, %v1408_v31 }
 0x7b5   : > { %v1432_v0 = vmul.f32 0.7978846, %v1428_v60  ;;  %v1972_v1 = vpop.eup %1971 }
 0x7b6   : > { %v1439_v3 = vadd.f32 1.0, %v1972_v1 }
 0x7b7   : > { %1973 = vtanh.f32 %v1432_v0 }
 0x7b8   : > { %v1443_v14 = vmul.f32 0.5, %v1439_v3 }
 0x7ba   : > { %v1447_v10 = vmul.f32 %v1443_v14, %v1406_v52 }
 0x7bd   : > { %v1974_v5 = vpop.eup %1973 }
 0x7be   : > { %v1440_v24 = vadd.f32 1.0, %v1974_v5 }
 0x7c0   : > { %v1444_v9 = vmul.f32 0.5, %v1440_v24 }
 0x7c2   : > { %v1448_v15 = vmul.f32 %v1444_v9, %v1408_v31 }
 0x7c4   : > { %v1451_v17 = vpack.c.bf16 %v1448_v15, %v1447_v10 }
 0x7c6   : > { %1526 = vmatmul.bf16.vlgmr.msrb.gmra.mxu0 %v1451_v17 }
 0x7d9   : > { %v1410_v19 = vpop.f32.mrf.mxu3 }
 0x7da   : > { %v1411_v49 = vadd.f32 %v1410_v19, %v1377_v36 }
 0x7dc   : > { %v1417_v61 = vmul.f32 %v1411_v49, %v1411_v49 }
 0x7de   : > { %v1421_v20 = vmul.f32 %v1417_v61, %v1411_v49 }
 0x7e0   : > { %v1425_v2 = vmul.f32 0.044715, %v1421_v20 }
 0x7e1   : > { %v1412_v21 = vpop.f32.mrf.mxu3 }
 0x7e2   : > { %v1429_v56 = vadd.f32 %v1425_v2, %v1411_v49  ;;  %v1413_v28 = vadd.f32 %v1412_v21, %v1377_v36 }
 0x7e4   : > { %v1418_v29 = vmul.f32 %v1413_v28, %v1413_v28  ;;  %v1433_v30 = vmul.f32 0.7978846, %v1429_v56 }
 0x7e6   : > { %v1422_v34 = vmul.f32 %v1418_v29, %v1413_v28  ;;  %1975 = vtanh.f32 %v1433_v30 }
 0x7e8   : > { %v1426_v35 = vmul.f32 0.044715, %v1422_v34 }
 0x7ea   : > { %v1430_v40 = vadd.f32 %v1426_v35, %v1413_v28 }
 0x7ec   : > { %v1434_v12 = vmul.f32 0.7978846, %v1430_v40  ;;  %v1976_v63 = vpop.eup %1975 }
 0x7ed   : > { %v1441_v7 = vadd.f32 1.0, %v1976_v63 }
 0x7ee   : > { %1977 = vtanh.f32 %v1434_v12 }
 0x7ef   : > { %v1445_v18 = vmul.f32 0.5, %v1441_v7 }
 0x7f1   : > { %v1449_v26 = vmul.f32 %v1445_v18, %v1411_v49 }
 0x7f4   : > { %v1978_v57 = vpop.eup %1977 }
 0x7f5   : > { %v1442_v37 = vadd.f32 1.0, %v1978_v57 }
 0x7f7   : > { %v1446_v38 = vmul.f32 0.5, %v1442_v37 }
 0x7f9   : > { %v1450_v41 = vmul.f32 %v1446_v38, %v1413_v28 }
 0x7fb   : > { %v1452_v13 = vpack.c.bf16 %v1450_v41, %v1449_v26 }
 0x7fd   : > { %1531 = vmatmul.bf16.gmra.mxu0 %v1452_v13 }
 0x843   : > { %v1527_v43 = vpop.f32.mrf.mxu0 }
 0x844   : > { %v1528_v6 = vadd.f32 %v1527_v43, %v1469_v42 }
 0x846   : > { %v1537_v44 = vadd.f32 %v1528_v6, %v2398_v8 }
 0x848   : > { %1541 = vst.msk [vmem:[#allocation2] sm:$0xff] %vm388_vm1, %v1537_v44 }
 0x84b   : > { %v1529_v45 = vpop.f32.mrf.mxu0 }
 0x84c   : > { %v1530_v16 = vadd.f32 %v1529_v45, %v1469_v42 }
 0x84e   : > { %v1538_v51 = vadd.f32 %v1530_v16, %v2402_v11 }
 0x850   : > { %1542 = vst.msk [vmem:[#allocation2 + $0x8] sm:$0xff] %vm388_vm1, %v1538_v51 }
 0x87a   : > { %v1532_v32 = vpop.f32.mrf.mxu0 }
 0x87b   : > { %v1533_v47 = vadd.f32 %v1532_v32, %v1469_v42 }
 0x87d   : > { %v1539_v23 = vadd.f32 %v1533_v47, %v2406_v46 }
 0x87f   : > { %1543 = vst.msk [vmem:[#allocation2 + $0x10] sm:$0xff] %vm388_vm1, %v1539_v23 }
 0x882   : > { %v1534_v48 = vpop.f32.mrf.mxu0 }
 0x883   : > { %v1535_v59 = vadd.f32 %v1534_v48, %v1469_v42  ;;  %1548 = sbr.rel (%p1787_p8) target bundleno = 2190 (0x88e), region = 52 }
 0x885   : > { %v1540_v36 = vadd.f32 %v1535_v59, %v2410_v25 }
 0x887   : > { %1544 = vst.msk [vmem:[#allocation2 + $0x18] sm:$0xff] %vm388_vm1, %v1540_v36 }
 0x888   : > { %v1549_v8 = vpack.c.bf16 %v1537_v44, %v1537_v44  ;;  %vm1553_vm15 = vcmask 257024   ;;  %v1550_v11 = vpack.c.bf16 %v1538_v51, %v1538_v51  ;;  %v1551_v22 = vpack.c.bf16 %v1539_v23, %v1539_v23 }
 0x889   : > { %v1552_v46 = vpack.c.bf16 %v1540_v36, %v1540_v36 }
 0x88a   : > { %1554 = vst.msk [vmem:[%s2133_s16] sm:$0xf] %vm1553_vm15, %v1549_v8 }
 0x88b   : > { %1555 = vst.msk [vmem:[%s2133_s16 + $0x4] sm:$0xf] %vm1553_vm15, %v1550_v11 }
 0x88c   : > { %1556 = vst.msk [vmem:[%s2133_s16 + $0x8] sm:$0xf] %vm1553_vm15, %v1551_v22 }
 0x88d   : > { %1557 = vst.msk [vmem:[%s2133_s16 + $0xc] sm:$0xf] %vm1553_vm15, %v1552_v46 }
 0x88e PF: > { %s16_s25 = sadd.s32 1, %s2022_s25   ;;  %s2495_s14 = sld [smem:[#allocation3_spill]] }
 0x88f   : > { %p13_p9 = scmp.ge.s32.totalorder %s16_s25, 6   ;;  %s2496_s17 = sld [smem:[#allocation4_spill]] }
 0x890   : > { %s2497_s21 = smov %s2014_s23  ;;  %s2498_s22 = smov %s2018_s24 }
 0x891   :  { %15 = sbr.rel (!%p13_p9) target bundleno = 3 (0x3), region = 97 }
 0x894   : > { %s2499_s23 = smov %s2495_s14 }
 0x895   : > { %s2500_s24 = smov %s2496_s17 }

</bundles_post_ra>
